<compile_context>
chip_gen: v5e
topology: v5e:2x2
jax: 0.10.0
libtpu: 0.0.40
codegen_flags: <defaults>
</compile_context>

<pallas_src>
import functools
import math

import jax
import jax.numpy as jnp
from jax.experimental import pallas as pl
from jax.experimental.pallas import tpu as pltpu


def _encoder_stack_kernel(x_ref,
                          in_w_ref, in_b_ref,        # (E, 3E) f32, (1, 3E) f32
                          out_w_ref, out_b_ref,      # (E, E)  f32, (1, E)  f32
                          ln1_w_ref, ln1_b_ref,      # (1, E),      (1, E)
                          lin1_w_ref, lin1_b_ref,    # (E, F) bf16, (1, F)  f32
                          lin2_w_ref, lin2_b_ref,    # (F, E) bf16, (1, E)  f32
                          ln2_w_ref, ln2_b_ref,      # (1, E),      (1, E)
                          o_ref,
                          *, num_heads, eps):
    layer = pl.program_id(1)

    # The output block (constant block index along the layer axis) stays
    # VMEM-resident and doubles as the layer-to-layer carry.  Seed it with the
    # module input on the first layer of each batch chunk.
    @pl.when(layer == 0)
    def _():
        o_ref[...] = x_ref[...]

    xb = o_ref[...]                              # (Bc, S, E) float32
    Bc, S, E = xb.shape
    H = num_heads
    D = E // H
    R = Bc * S
    scale = 1.0 / math.sqrt(D)

    x2 = xb.reshape(R, E)                        # leading-dim merge: layout no-op

    # ---- multi-head self-attention (head-batched) ----------------------------
    qkv = jnp.dot(x2, in_w_ref[...], preferred_element_type=jnp.float32) + in_b_ref[...]

    def split_heads(base):
        # Stack per-head lane slices onto a new (untiled) leading axis, then
        # merge it with the batch axis -> single 3-D batched attention.
        return jnp.stack(
            [qkv[:, base + h * D: base + (h + 1) * D].reshape(Bc, S, D)
             for h in range(H)], axis=0).reshape(H * Bc, S, D)

    qh = split_heads(0)
    kh = split_heads(E)
    vh = split_heads(2 * E)

    s = jnp.einsum('bqd,bkd->bqk', qh, kh,
                   preferred_element_type=jnp.float32) * scale     # (H*Bc, S, S)
    s = s - jnp.max(s, axis=-1, keepdims=True)
    p = jnp.exp(s)
    p = p / jnp.sum(p, axis=-1, keepdims=True)                      # exact softmax
    ctx = jnp.einsum('bqk,bkd->bqd', p, vh,
                     preferred_element_type=jnp.float32)            # (H*Bc, S, D)

    # Re-assemble heads on the lane axis and do ONE output-projection dot.
    ctx = ctx.reshape(H, Bc, S, D)
    ctx = jnp.concatenate([ctx[h] for h in range(H)], axis=-1).reshape(R, E)
    attn = jnp.dot(ctx, out_w_ref[...],
                   preferred_element_type=jnp.float32) + out_b_ref[...]

    # ---- residual + LayerNorm1 (post-LN) --------------------------------------
    h1 = x2 + attn
    mu1 = jnp.mean(h1, axis=-1, keepdims=True)
    var1 = jnp.mean((h1 - mu1) ** 2, axis=-1, keepdims=True)
    h1n = (h1 - mu1) * jax.lax.rsqrt(var1 + eps) * ln1_w_ref[...] + ln1_b_ref[...]

    # ---- feed-forward: linear1 -> relu -> linear2 (bf16 operands, f32 accum) ---
    f = jnp.dot(h1n.astype(jnp.bfloat16), lin1_w_ref[...],
                preferred_element_type=jnp.float32) + lin1_b_ref[...]
    f = jnp.maximum(f, 0.0)
    f = jnp.dot(f.astype(jnp.bfloat16), lin2_w_ref[...],
                preferred_element_type=jnp.float32) + lin2_b_ref[...]

    # ---- residual + LayerNorm2 --------------------------------------------------
    h2 = h1n + f
    mu2 = jnp.mean(h2, axis=-1, keepdims=True)
    var2 = jnp.mean((h2 - mu2) ** 2, axis=-1, keepdims=True)
    out = (h2 - mu2) * jax.lax.rsqrt(var2 + eps) * ln2_w_ref[...] + ln2_b_ref[...]

    o_ref[...] = out.reshape(Bc, S, E).astype(o_ref.dtype)


def pack_params(layer_params):
    """One-time preprocessing: stack layers and pre-transpose to kernel layout."""
    E = layer_params[0]["out_w"].shape[0]
    F = layer_params[0]["lin1_w"].shape[0]

    def stack(fn):
        return jnp.stack([fn(p) for p in layer_params], axis=0)

    return dict(
        in_w_t=stack(lambda p: p["in_w"].T),                              # (L, E, 3E) f32
        in_b=stack(lambda p: p["in_b"].reshape(1, 3 * E)),                # (L, 1, 3E) f32
        out_w_t=stack(lambda p: p["out_w"].T),                            # (L, E, E)  f32
        out_b=stack(lambda p: p["out_b"].reshape(1, E)),
        ln1_w=stack(lambda p: p["ln1_w"].reshape(1, E)),
        ln1_b=stack(lambda p: p["ln1_b"].reshape(1, E)),
        lin1_w_t=stack(lambda p: p["lin1_w"].T.astype(jnp.bfloat16)),     # (L, E, F) bf16
        lin1_b=stack(lambda p: p["lin1_b"].reshape(1, F)),                # f32
        lin2_w_t=stack(lambda p: p["lin2_w"].T.astype(jnp.bfloat16)),     # (L, F, E) bf16
        lin2_b=stack(lambda p: p["lin2_b"].reshape(1, E)),                # f32
        ln2_w=stack(lambda p: p["ln2_w"].reshape(1, E)),
        ln2_b=stack(lambda p: p["ln2_b"].reshape(1, E)),
    )


def vocab_encoder_forward(x_sne, packed, num_heads, *, eps=1e-5, batch_chunks=1):
    """Full VocabEncoder.forward. x_sne: (S, N, E), PyTorch batch_first=False layout.

    batch_chunks: optional leading 'parallel' grid axis (dual-TensorCore on v7x).
    Only worth using when each chunk still provides >= ~128 rows (Bc*S) of MXU
    work; splitting tiny batches doubles per-TC weight DMA for no gain, so the
    guard below keeps a single chunk in that case.
    """
    S, N, E = x_sne.shape
    L = packed["in_w_t"].shape[0]
    F = packed["lin1_w_t"].shape[2]
    assert E % num_heads == 0

    if batch_chunks > 1 and (N % batch_chunks != 0 or (N // batch_chunks) * S < 128):
        batch_chunks = 1                      # guard: never starve the MXU / double weight DMA
    Bc = N // batch_chunks

    x_bse = jnp.transpose(x_sne, (1, 0, 2)).astype(jnp.float32)   # (N, S, E)

    def wspec(shape):
        zeros = (0,) * len(shape)
        # leading layer dim squeezed out of the kernel view; block index = layer
        return pl.BlockSpec((None,) + shape, lambda c, l, _z=zeros: (l,) + _z)

    kernel = functools.partial(_encoder_stack_kernel, num_heads=num_heads, eps=eps)

    # Advisory cost estimate (kernel is launch/overhead dominated at small sizes).
    R = N * S
    flops = int(2 * L * R * (3 * E * E + E * E + 2 * S * E + 2 * E * F))
    transcendentals = int(L * (R * S + 2 * R))
    weight_bytes = sum(int(v.size) * v.dtype.itemsize for v in packed.values())
    bytes_accessed = int(weight_bytes + 2 * x_bse.size * x_bse.dtype.itemsize)

    out = pl.pallas_call(
        kernel,
        out_shape=jax.ShapeDtypeStruct((N, S, E), jnp.float32),
        grid=(batch_chunks, L),
        in_specs=[
            pl.BlockSpec((Bc, S, E), lambda c, l: (c, 0, 0)),
            wspec((E, 3 * E)), wspec((1, 3 * E)),
            wspec((E, E)), wspec((1, E)),
            wspec((1, E)), wspec((1, E)),
            wspec((E, F)), wspec((1, F)),
            wspec((F, E)), wspec((1, E)),
            wspec((1, E)), wspec((1, E)),
        ],
        out_specs=pl.BlockSpec((Bc, S, E), lambda c, l: (c, 0, 0)),
        compiler_params=pltpu.CompilerParams(
            dimension_semantics=("parallel", "arbitrary"),
            vmem_limit_bytes=32 * 1024 * 1024),
        cost_estimate=pl.CostEstimate(flops=flops,
                                      transcendentals=transcendentals,
                                      bytes_accessed=bytes_accessed),
    )(x_bse,
      packed["in_w_t"], packed["in_b"],
      packed["out_w_t"], packed["out_b"],
      packed["ln1_w"], packed["ln1_b"],
      packed["lin1_w_t"], packed["lin1_b"],
      packed["lin2_w_t"], packed["lin2_b"],
      packed["ln2_w"], packed["ln2_b"])

    return jnp.transpose(out, (1, 0, 2))      # back to (S, N, E)


def init_params(key, embed_dim, num_layers, dim_feedforward):
    """Deterministic synthetic parameters with PyTorch TransformerEncoderLayer shapes."""
    E, F = embed_dim, dim_feedforward
    layers = []
    for i in range(num_layers):
        ks = jax.random.split(jax.random.fold_in(key, i), 8)
        layers.append(dict(
            in_w=0.02 * jax.random.normal(ks[0], (3 * E, E), jnp.float32),
            in_b=0.02 * jax.random.normal(ks[1], (3 * E,), jnp.float32),
            out_w=0.02 * jax.random.normal(ks[2], (E, E), jnp.float32),
            out_b=0.02 * jax.random.normal(ks[3], (E,), jnp.float32),
            lin1_w=0.02 * jax.random.normal(ks[4], (F, E), jnp.float32),
            lin1_b=0.02 * jax.random.normal(ks[5], (F,), jnp.float32),
            lin2_w=0.02 * jax.random.normal(ks[6], (E, F), jnp.float32),
            lin2_b=0.02 * jax.random.normal(ks[7], (E,), jnp.float32),
            ln1_w=jnp.ones((E,), jnp.float32),
            ln1_b=jnp.zeros((E,), jnp.float32),
            ln2_w=jnp.ones((E,), jnp.float32),
            ln2_b=jnp.zeros((E,), jnp.float32),
        ))
    return layers


def _reference_forward(x_sne, layer_params, num_heads, eps=1e-5):
    """Pure-JAX f32 reference matching PyTorch TransformerEncoder (eval mode)."""
    S, N, E = x_sne.shape
    H, D = num_heads, E // num_heads
    x = jnp.transpose(x_sne, (1, 0, 2)).astype(jnp.float32)      # (N, S, E)
    for p in layer_params:
        qkv = x @ p["in_w"].T + p["in_b"]
        q, k, v = qkv[..., :E], qkv[..., E:2 * E], qkv[..., 2 * E:]
        q = q.reshape(N, S, H, D).transpose(0, 2, 1, 3)
        k = k.reshape(N, S, H, D).transpose(0, 2, 1, 3)
        v = v.reshape(N, S, H, D).transpose(0, 2, 1, 3)
        s = jnp.einsum('nhqd,nhkd->nhqk', q, k) / math.sqrt(D)
        a = jax.nn.softmax(s, axis=-1)
        ctx = jnp.einsum('nhqk,nhkd->nhqd', a, v)
        ctx = ctx.transpose(0, 2, 1, 3).reshape(N, S, E)
        attn = ctx @ p["out_w"].T + p["out_b"]
        h1 = x + attn
        h1 = ((h1 - h1.mean(-1, keepdims=True))
              / jnp.sqrt(h1.var(-1, keepdims=True) + eps)) * p["ln1_w"] + p["ln1_b"]
        f = jnp.maximum(h1 @ p["lin1_w"].T + p["lin1_b"], 0.0)
        f = f @ p["lin2_w"].T + p["lin2_b"]
        h2 = h1 + f
        x = ((h2 - h2.mean(-1, keepdims=True))
             / jnp.sqrt(h2.var(-1, keepdims=True) + eps)) * p["ln2_w"] + p["ln2_b"]
    return jnp.transpose(x, (1, 0, 2))


if __name__ == "__main__":
    # Small config: embed_dim=32, num_heads=4, num_layers=2.
    # dim_feedforward=2048 matches the PyTorch TransformerEncoderLayer default.
    embed_dim, num_heads, num_layers, dim_feedforward = 32, 4, 2, 2048
    S, N = 8, 2                              # seq=8, batch=2

    key = jax.random.PRNGKey(0)
    kx, kp = jax.random.split(key)
    x = jax.random.normal(kx, (S, N, embed_dim), jnp.float32)   # (S, N, E), batch_first=False
    params = init_params(kp, embed_dim, num_layers, dim_feedforward)
    packed = pack_params(params)             # one-time, hoisted out of the forward path

    fwd = jax.jit(functools.partial(vocab_encoder_forward, num_heads=num_heads))
    out = fwd(x, packed)
    jax.block_until_ready(out)

    ref = _reference_forward(x, params, num_heads)
    max_err = float(jnp.max(jnp.abs(out - ref)))

    assert out.shape == (S, N, embed_dim)
    assert bool(jnp.all(jnp.isfinite(out)))
    # bf16 FFN weights (f32 accumulation) keep the error well below this bound.
    assert max_err < 2e-2, f"max abs err {max_err}"
    print("KERNEL_OK")
</pallas_src>

<mosaic_0001>
module attributes {stable_mosaic.version = 11 : i64} {
  func.func @_encoder_stack_kernel(%arg0: i32, %arg1: i32, %arg2: memref<2x8x32xf32, #tpu.memory_space<vmem>>, %arg3: memref<1x32x96xf32, #tpu.memory_space<vmem>>, %arg4: memref<1x1x96xf32, #tpu.memory_space<vmem>>, %arg5: memref<1x32x32xf32, #tpu.memory_space<vmem>>, %arg6: memref<1x1x32xf32, #tpu.memory_space<vmem>>, %arg7: memref<1x1x32xf32, #tpu.memory_space<vmem>>, %arg8: memref<1x1x32xf32, #tpu.memory_space<vmem>>, %arg9: memref<1x32x2048xbf16, #tpu.memory_space<vmem>>, %arg10: memref<1x1x2048xf32, #tpu.memory_space<vmem>>, %arg11: memref<1x2048x32xbf16, #tpu.memory_space<vmem>>, %arg12: memref<1x1x32xf32, #tpu.memory_space<vmem>>, %arg13: memref<1x1x32xf32, #tpu.memory_space<vmem>>, %arg14: memref<1x1x32xf32, #tpu.memory_space<vmem>>, %arg15: memref<2x8x32xf32, #tpu.memory_space<vmem>>) attributes {dimension_semantics = [#tpu.dimension_semantics<parallel>, #tpu.dimension_semantics<arbitrary>], iteration_bounds = array<i64: 1, 2>, scalar_prefetch = 0 : i64, scratch_operands = 0 : i64, tpu.core_type = #tpu.core_type<tc>, window_params = [{transform_indices = @transform_0, window_bounds = array<i64: 2, 8, 32>}, {transform_indices = @transform_1, window_bounds = array<i64: 1, 32, 96>}, {transform_indices = @transform_2, window_bounds = array<i64: 1, 1, 96>}, {transform_indices = @transform_3, window_bounds = array<i64: 1, 32, 32>}, {transform_indices = @transform_4, window_bounds = array<i64: 1, 1, 32>}, {transform_indices = @transform_5, window_bounds = array<i64: 1, 1, 32>}, {transform_indices = @transform_6, window_bounds = array<i64: 1, 1, 32>}, {transform_indices = @transform_7, window_bounds = array<i64: 1, 32, 2048>}, {transform_indices = @transform_8, window_bounds = array<i64: 1, 1, 2048>}, {transform_indices = @transform_9, window_bounds = array<i64: 1, 2048, 32>}, {transform_indices = @transform_10, window_bounds = array<i64: 1, 1, 32>}, {transform_indices = @transform_11, window_bounds = array<i64: 1, 1, 32>}, {transform_indices = @transform_12, window_bounds = array<i64: 1, 1, 32>}, {transform_indices = @transform_13, window_bounds = array<i64: 2, 8, 32>}]} {
    %c0_i32 = arith.constant 0 : i32
    %0 = arith.cmpi eq, %arg1, %c0_i32 : i32
    %1 = arith.extui %0 : i1 to i32
    %c0_i32_0 = arith.constant 0 : i32
    %2 = arith.cmpi ne, %1, %c0_i32_0 : i32
    scf.if %2 {
      %c0_61 = arith.constant 0 : index
      %c0_62 = arith.constant 0 : index
      %c0_63 = arith.constant 0 : index
      %159 = vector.load %arg2[%c0_61, %c0_62, %c0_63] : memref<2x8x32xf32, #tpu.memory_space<vmem>>, vector<2x8x32xf32>
      %c0_64 = arith.constant 0 : index
      %c0_65 = arith.constant 0 : index
      %c0_66 = arith.constant 0 : index
      %160 = vector.load %arg15[%c0_64, %c0_65, %c0_66] : memref<2x8x32xf32, #tpu.memory_space<vmem>>, vector<2x8x32xf32>
      tpu.vector_store %arg15[%c0_64, %c0_65, %c0_66], %159 {strides = array<i32>} : memref<2x8x32xf32, #tpu.memory_space<vmem>>, vector<2x8x32xf32>,
    } else {
    }
    %c0 = arith.constant 0 : index
    %c0_1 = arith.constant 0 : index
    %c0_2 = arith.constant 0 : index
    %3 = vector.load %arg15[%c0, %c0_1, %c0_2] : memref<2x8x32xf32, #tpu.memory_space<vmem>>, vector<2x8x32xf32>
    %4 = vector.shape_cast %3 : vector<2x8x32xf32> to vector<16x32xf32>
    %c0_3 = arith.constant 0 : index
    %c0_4 = arith.constant 0 : index
    %c0_5 = arith.constant 0 : index
    %5 = vector.load %arg3[%c0_3, %c0_4, %c0_5] : memref<1x32x96xf32, #tpu.memory_space<vmem>>, vector<1x32x96xf32>
    %6 = vector.shape_cast %5 : vector<1x32x96xf32> to vector<32x96xf32>
    %cst = arith.constant dense<0.000000e+00> : vector<16x96xf32>
    %7 = tpu.matmul %4, %6, %cst {dimension_numbers = #tpu.dot_dimension_numbers<[1], [0], [0], [1], [0, 0, 1, 1], [], []>} : vector<16x32xf32>, vector<32x96xf32>, vector<16x96xf32> -> vector<16x96xf32>
    %c0_6 = arith.constant 0 : index
    %c0_7 = arith.constant 0 : index
    %c0_8 = arith.constant 0 : index
    %8 = vector.load %arg4[%c0_6, %c0_7, %c0_8] : memref<1x1x96xf32, #tpu.memory_space<vmem>>, vector<1x1x96xf32>
    %9 = vector.shape_cast %8 : vector<1x1x96xf32> to vector<1x96xf32>
    %10 = vector.broadcast %9 : vector<1x96xf32> to vector<16x96xf32>
    %11 = arith.addf %7, %10 : vector<16x96xf32>
    %12 = vector.extract_strided_slice %11 {offsets = [0, 0], sizes = [16, 8], strides = [1, 1]} : vector<16x96xf32> to vector<16x8xf32>
    %13 = vector.shape_cast %12 : vector<16x8xf32> to vector<2x8x8xf32>
    %14 = vector.extract_strided_slice %11 {offsets = [0, 8], sizes = [16, 8], strides = [1, 1]} : vector<16x96xf32> to vector<16x8xf32>
    %15 = vector.shape_cast %14 : vector<16x8xf32> to vector<2x8x8xf32>
    %16 = vector.extract_strided_slice %11 {offsets = [0, 16], sizes = [16, 8], strides = [1, 1]} : vector<16x96xf32> to vector<16x8xf32>
    %17 = vector.shape_cast %16 : vector<16x8xf32> to vector<2x8x8xf32>
    %18 = vector.extract_strided_slice %11 {offsets = [0, 24], sizes = [16, 8], strides = [1, 1]} : vector<16x96xf32> to vector<16x8xf32>
    %19 = vector.shape_cast %18 : vector<16x8xf32> to vector<2x8x8xf32>
    %20 = vector.shape_cast %13 : vector<2x8x8xf32> to vector<1x2x8x8xf32>
    %21 = vector.shape_cast %15 : vector<2x8x8xf32> to vector<1x2x8x8xf32>
    %22 = vector.shape_cast %17 : vector<2x8x8xf32> to vector<1x2x8x8xf32>
    %23 = vector.shape_cast %19 : vector<2x8x8xf32> to vector<1x2x8x8xf32>
    %24 = tpu.concatenate %20, %21, %22, %23 in 0 : vector<1x2x8x8xf32>, vector<1x2x8x8xf32>, vector<1x2x8x8xf32>, vector<1x2x8x8xf32> -> vector<4x2x8x8xf32>
    %25 = vector.shape_cast %24 : vector<4x2x8x8xf32> to vector<8x8x8xf32>
    %26 = vector.extract_strided_slice %11 {offsets = [0, 32], sizes = [16, 8], strides = [1, 1]} : vector<16x96xf32> to vector<16x8xf32>
    %27 = vector.shape_cast %26 : vector<16x8xf32> to vector<2x8x8xf32>
    %28 = vector.extract_strided_slice %11 {offsets = [0, 40], sizes = [16, 8], strides = [1, 1]} : vector<16x96xf32> to vector<16x8xf32>
    %29 = vector.shape_cast %28 : vector<16x8xf32> to vector<2x8x8xf32>
    %30 = vector.extract_strided_slice %11 {offsets = [0, 48], sizes = [16, 8], strides = [1, 1]} : vector<16x96xf32> to vector<16x8xf32>
    %31 = vector.shape_cast %30 : vector<16x8xf32> to vector<2x8x8xf32>
    %32 = vector.extract_strided_slice %11 {offsets = [0, 56], sizes = [16, 8], strides = [1, 1]} : vector<16x96xf32> to vector<16x8xf32>
    %33 = vector.shape_cast %32 : vector<16x8xf32> to vector<2x8x8xf32>
    %34 = vector.shape_cast %27 : vector<2x8x8xf32> to vector<1x2x8x8xf32>
    %35 = vector.shape_cast %29 : vector<2x8x8xf32> to vector<1x2x8x8xf32>
    %36 = vector.shape_cast %31 : vector<2x8x8xf32> to vector<1x2x8x8xf32>
    %37 = vector.shape_cast %33 : vector<2x8x8xf32> to vector<1x2x8x8xf32>
    %38 = tpu.concatenate %34, %35, %36, %37 in 0 : vector<1x2x8x8xf32>, vector<1x2x8x8xf32>, vector<1x2x8x8xf32>, vector<1x2x8x8xf32> -> vector<4x2x8x8xf32>
    %39 = vector.shape_cast %38 : vector<4x2x8x8xf32> to vector<8x8x8xf32>
    %40 = vector.extract_strided_slice %11 {offsets = [0, 64], sizes = [16, 8], strides = [1, 1]} : vector<16x96xf32> to vector<16x8xf32>
    %41 = vector.shape_cast %40 : vector<16x8xf32> to vector<2x8x8xf32>
    %42 = vector.extract_strided_slice %11 {offsets = [0, 72], sizes = [16, 8], strides = [1, 1]} : vector<16x96xf32> to vector<16x8xf32>
    %43 = vector.shape_cast %42 : vector<16x8xf32> to vector<2x8x8xf32>
    %44 = vector.extract_strided_slice %11 {offsets = [0, 80], sizes = [16, 8], strides = [1, 1]} : vector<16x96xf32> to vector<16x8xf32>
    %45 = vector.shape_cast %44 : vector<16x8xf32> to vector<2x8x8xf32>
    %46 = vector.extract_strided_slice %11 {offsets = [0, 88], sizes = [16, 8], strides = [1, 1]} : vector<16x96xf32> to vector<16x8xf32>
    %47 = vector.shape_cast %46 : vector<16x8xf32> to vector<2x8x8xf32>
    %48 = vector.shape_cast %41 : vector<2x8x8xf32> to vector<1x2x8x8xf32>
    %49 = vector.shape_cast %43 : vector<2x8x8xf32> to vector<1x2x8x8xf32>
    %50 = vector.shape_cast %45 : vector<2x8x8xf32> to vector<1x2x8x8xf32>
    %51 = vector.shape_cast %47 : vector<2x8x8xf32> to vector<1x2x8x8xf32>
    %52 = tpu.concatenate %48, %49, %50, %51 in 0 : vector<1x2x8x8xf32>, vector<1x2x8x8xf32>, vector<1x2x8x8xf32>, vector<1x2x8x8xf32> -> vector<4x2x8x8xf32>
    %53 = vector.shape_cast %52 : vector<4x2x8x8xf32> to vector<8x8x8xf32>
    "tpu.trace_start"() <{level = 10 : i32, message = "bqd,bkd->bqk"}> : () -> ()
    %cst_9 = arith.constant dense<0.000000e+00> : vector<8x8x8xf32>
    %54 = tpu.matmul %25, %39, %cst_9 {dimension_numbers = #tpu.dot_dimension_numbers<[2], [2], [1], [1], [0, 0, 0, 1, 1, 1], [0], [0]>} : vector<8x8x8xf32>, vector<8x8x8xf32>, vector<8x8x8xf32> -> vector<8x8x8xf32>
    "tpu.trace_stop"() : () -> ()
    %cst_10 = arith.constant 0.353553385 : f32
    %55 = vector.broadcast %cst_10 : f32 to vector<8x8x8xf32>
    %56 = arith.mulf %54, %55 : vector<8x8x8xf32>
    %cst_11 = arith.constant dense<0xFF800000> : vector<8x8xf32>
    %57 = vector.multi_reduction <maximumf>, %56, %cst_11 [2] : vector<8x8x8xf32> to vector<8x8xf32>
    %58 = vector.shape_cast %57 : vector<8x8xf32> to vector<8x8x1xf32>
    %59 = vector.broadcast %58 : vector<8x8x1xf32> to vector<8x8x8xf32>
    %60 = arith.subf %56, %59 : vector<8x8x8xf32>
    %61 = math.exp %60 : vector<8x8x8xf32>
    %cst_12 = arith.constant dense<0.000000e+00> : vector<8x8xf32>
    %62 = vector.multi_reduction <add>, %61, %cst_12 [2] : vector<8x8x8xf32> to vector<8x8xf32>
    %63 = vector.shape_cast %62 : vector<8x8xf32> to vector<8x8x1xf32>
    %64 = vector.broadcast %63 : vector<8x8x1xf32> to vector<8x8x8xf32>
    %65 = arith.divf %61, %64 : vector<8x8x8xf32>
    "tpu.trace_start"() <{level = 10 : i32, message = "bqk,bkd->bqd"}> : () -> ()
    %cst_13 = arith.constant dense<0.000000e+00> : vector<8x8x8xf32>
    %66 = tpu.matmul %65, %53, %cst_13 {dimension_numbers = #tpu.dot_dimension_numbers<[2], [1], [1], [2], [0, 0, 0, 1, 1, 2], [0], [0]>} : vector<8x8x8xf32>, vector<8x8x8xf32>, vector<8x8x8xf32> -> vector<8x8x8xf32>
    "tpu.trace_stop"() : () -> ()
    %67 = vector.shape_cast %66 : vector<8x8x8xf32> to vector<4x2x8x8xf32>
    %68 = vector.extract_strided_slice %67 {offsets = [0, 0, 0, 0], sizes = [1, 2, 8, 8], strides = [1, 1, 1, 1]} : vector<4x2x8x8xf32> to vector<1x2x8x8xf32>
    %69 = vector.shape_cast %68 : vector<1x2x8x8xf32> to vector<2x8x8xf32>
    %70 = vector.extract_strided_slice %67 {offsets = [1, 0, 0, 0], sizes = [1, 2, 8, 8], strides = [1, 1, 1, 1]} : vector<4x2x8x8xf32> to vector<1x2x8x8xf32>
    %71 = vector.shape_cast %70 : vector<1x2x8x8xf32> to vector<2x8x8xf32>
    %72 = vector.extract_strided_slice %67 {offsets = [2, 0, 0, 0], sizes = [1, 2, 8, 8], strides = [1, 1, 1, 1]} : vector<4x2x8x8xf32> to vector<1x2x8x8xf32>
    %73 = vector.shape_cast %72 : vector<1x2x8x8xf32> to vector<2x8x8xf32>
    %74 = vector.extract_strided_slice %67 {offsets = [3, 0, 0, 0], sizes = [1, 2, 8, 8], strides = [1, 1, 1, 1]} : vector<4x2x8x8xf32> to vector<1x2x8x8xf32>
    %75 = vector.shape_cast %74 : vector<1x2x8x8xf32> to vector<2x8x8xf32>
    %76 = tpu.concatenate %69, %71, %73, %75 in 2 : vector<2x8x8xf32>, vector<2x8x8xf32>, vector<2x8x8xf32>, vector<2x8x8xf32> -> vector<2x8x32xf32>
    %77 = vector.shape_cast %76 : vector<2x8x32xf32> to vector<16x32xf32>
    %c0_14 = arith.constant 0 : index
    %c0_15 = arith.constant 0 : index
    %c0_16 = arith.constant 0 : index
    %78 = vector.load %arg5[%c0_14, %c0_15, %c0_16] : memref<1x32x32xf32, #tpu.memory_space<vmem>>, vector<1x32x32xf32>
    %79 = vector.shape_cast %78 : vector<1x32x32xf32> to vector<32x32xf32>
    %cst_17 = arith.constant dense<0.000000e+00> : vector<16x32xf32>
    %80 = tpu.matmul %77, %79, %cst_17 {dimension_numbers = #tpu.dot_dimension_numbers<[1], [0], [0], [1], [0, 0, 1, 1], [], []>} : vector<16x32xf32>, vector<32x32xf32>, vector<16x32xf32> -> vector<16x32xf32>
    %c0_18 = arith.constant 0 : index
    %c0_19 = arith.constant 0 : index
    %c0_20 = arith.constant 0 : index
    %81 = vector.load %arg6[%c0_18, %c0_19, %c0_20] : memref<1x1x32xf32, #tpu.memory_space<vmem>>, vector<1x1x32xf32>
    %82 = vector.shape_cast %81 : vector<1x1x32xf32> to vector<1x32xf32>
    %83 = vector.broadcast %82 : vector<1x32xf32> to vector<16x32xf32>
    %84 = arith.addf %80, %83 : vector<16x32xf32>
    %85 = arith.addf %4, %84 : vector<16x32xf32>
    %cst_21 = arith.constant dense<0.000000e+00> : vector<16xf32>
    %86 = vector.multi_reduction <add>, %85, %cst_21 [1] : vector<16x32xf32> to vector<16xf32>
    %87 = vector.shape_cast %86 : vector<16xf32> to vector<16x1xf32>
    %cst_22 = arith.constant 3.200000e+01 : f32
    %88 = vector.broadcast %cst_22 : f32 to vector<16x1xf32>
    %89 = arith.divf %87, %88 : vector<16x1xf32>
    %90 = vector.broadcast %89 : vector<16x1xf32> to vector<16x32xf32>
    %91 = arith.subf %85, %90 : vector<16x32xf32>
    %92 = arith.mulf %91, %91 : vector<16x32xf32>
    %cst_23 = arith.constant dense<0.000000e+00> : vector<16xf32>
    %93 = vector.multi_reduction <add>, %92, %cst_23 [1] : vector<16x32xf32> to vector<16xf32>
    %94 = vector.shape_cast %93 : vector<16xf32> to vector<16x1xf32>
    %cst_24 = arith.constant 3.200000e+01 : f32
    %95 = vector.broadcast %cst_24 : f32 to vector<16x1xf32>
    %96 = arith.divf %94, %95 : vector<16x1xf32>
    %97 = vector.broadcast %89 : vector<16x1xf32> to vector<16x32xf32>
    %98 = arith.subf %85, %97 : vector<16x32xf32>
    %cst_25 = arith.constant 9.99999974E-6 : f32
    %99 = vector.broadcast %cst_25 : f32 to vector<16x1xf32>
    %100 = arith.addf %96, %99 : vector<16x1xf32>
    %101 = math.rsqrt %100 : vector<16x1xf32>
    %102 = vector.broadcast %101 : vector<16x1xf32> to vector<16x32xf32>
    %103 = arith.mulf %98, %102 : vector<16x32xf32>
    %c0_26 = arith.constant 0 : index
    %c0_27 = arith.constant 0 : index
    %c0_28 = arith.constant 0 : index
    %104 = vector.load %arg7[%c0_26, %c0_27, %c0_28] : memref<1x1x32xf32, #tpu.memory_space<vmem>>, vector<1x1x32xf32>
    %105 = vector.shape_cast %104 : vector<1x1x32xf32> to vector<1x32xf32>
    %106 = vector.broadcast %105 : vector<1x32xf32> to vector<16x32xf32>
    %107 = arith.mulf %103, %106 : vector<16x32xf32>
    %c0_29 = arith.constant 0 : index
    %c0_30 = arith.constant 0 : index
    %c0_31 = arith.constant 0 : index
    %108 = vector.load %arg8[%c0_29, %c0_30, %c0_31] : memref<1x1x32xf32, #tpu.memory_space<vmem>>, vector<1x1x32xf32>
    %109 = vector.shape_cast %108 : vector<1x1x32xf32> to vector<1x32xf32>
    %110 = vector.broadcast %109 : vector<1x32xf32> to vector<16x32xf32>
    %111 = arith.addf %107, %110 : vector<16x32xf32>
    %112 = arith.truncf %111 : vector<16x32xf32> to vector<16x32xbf16>
    %c0_32 = arith.constant 0 : index
    %c0_33 = arith.constant 0 : index
    %c0_34 = arith.constant 0 : index
    %113 = vector.load %arg9[%c0_32, %c0_33, %c0_34] : memref<1x32x2048xbf16, #tpu.memory_space<vmem>>, vector<1x32x2048xbf16>
    %114 = vector.shape_cast %113 : vector<1x32x2048xbf16> to vector<32x2048xbf16>
    %cst_35 = arith.constant dense<0.000000e+00> : vector<16x2048xf32>
    %115 = tpu.matmul %112, %114, %cst_35 {dimension_numbers = #tpu.dot_dimension_numbers<[1], [0], [0], [1], [0, 0, 1, 1], [], []>} : vector<16x32xbf16>, vector<32x2048xbf16>, vector<16x2048xf32> -> vector<16x2048xf32>
    %c0_36 = arith.constant 0 : index
    %c0_37 = arith.constant 0 : index
    %c0_38 = arith.constant 0 : index
    %116 = vector.load %arg10[%c0_36, %c0_37, %c0_38] : memref<1x1x2048xf32, #tpu.memory_space<vmem>>, vector<1x1x2048xf32>
    %117 = vector.shape_cast %116 : vector<1x1x2048xf32> to vector<1x2048xf32>
    %118 = vector.broadcast %117 : vector<1x2048xf32> to vector<16x2048xf32>
    %119 = arith.addf %115, %118 : vector<16x2048xf32>
    %cst_39 = arith.constant 0.000000e+00 : f32
    %120 = vector.broadcast %cst_39 : f32 to vector<16x2048xf32>
    %121 = arith.maximumf %119, %120 : vector<16x2048xf32>
    %122 = arith.truncf %121 : vector<16x2048xf32> to vector<16x2048xbf16>
    %c0_40 = arith.constant 0 : index
    %c0_41 = arith.constant 0 : index
    %c0_42 = arith.constant 0 : index
    %123 = vector.load %arg11[%c0_40, %c0_41, %c0_42] : memref<1x2048x32xbf16, #tpu.memory_space<vmem>>, vector<1x2048x32xbf16>
    %124 = vector.shape_cast %123 : vector<1x2048x32xbf16> to vector<2048x32xbf16>
    %cst_43 = arith.constant dense<0.000000e+00> : vector<16x32xf32>
    %125 = tpu.matmul %122, %124, %cst_43 {dimension_numbers = #tpu.dot_dimension_numbers<[1], [0], [0], [1], [0, 0, 1, 1], [], []>} : vector<16x2048xbf16>, vector<2048x32xbf16>, vector<16x32xf32> -> vector<16x32xf32>
    %c0_44 = arith.constant 0 : index
    %c0_45 = arith.constant 0 : index
    %c0_46 = arith.constant 0 : index
    %126 = vector.load %arg12[%c0_44, %c0_45, %c0_46] : memref<1x1x32xf32, #tpu.memory_space<vmem>>, vector<1x1x32xf32>
    %127 = vector.shape_cast %126 : vector<1x1x32xf32> to vector<1x32xf32>
    %128 = vector.broadcast %127 : vector<1x32xf32> to vector<16x32xf32>
    %129 = arith.addf %125, %128 : vector<16x32xf32>
    %130 = arith.addf %111, %129 : vector<16x32xf32>
    %cst_47 = arith.constant dense<0.000000e+00> : vector<16xf32>
    %131 = vector.multi_reduction <add>, %130, %cst_47 [1] : vector<16x32xf32> to vector<16xf32>
    %132 = vector.shape_cast %131 : vector<16xf32> to vector<16x1xf32>
    %cst_48 = arith.constant 3.200000e+01 : f32
    %133 = vector.broadcast %cst_48 : f32 to vector<16x1xf32>
    %134 = arith.divf %132, %133 : vector<16x1xf32>
    %135 = vector.broadcast %134 : vector<16x1xf32> to vector<16x32xf32>
    %136 = arith.subf %130, %135 : vector<16x32xf32>
    %137 = arith.mulf %136, %136 : vector<16x32xf32>
    %cst_49 = arith.constant dense<0.000000e+00> : vector<16xf32>
    %138 = vector.multi_reduction <add>, %137, %cst_49 [1] : vector<16x32xf32> to vector<16xf32>
    %139 = vector.shape_cast %138 : vector<16xf32> to vector<16x1xf32>
    %cst_50 = arith.constant 3.200000e+01 : f32
    %140 = vector.broadcast %cst_50 : f32 to vector<16x1xf32>
    %141 = arith.divf %139, %140 : vector<16x1xf32>
    %142 = vector.broadcast %134 : vector<16x1xf32> to vector<16x32xf32>
    %143 = arith.subf %130, %142 : vector<16x32xf32>
    %cst_51 = arith.constant 9.99999974E-6 : f32
    %144 = vector.broadcast %cst_51 : f32 to vector<16x1xf32>
    %145 = arith.addf %141, %144 : vector<16x1xf32>
    %146 = math.rsqrt %145 : vector<16x1xf32>
    %147 = vector.broadcast %146 : vector<16x1xf32> to vector<16x32xf32>
    %148 = arith.mulf %143, %147 : vector<16x32xf32>
    %c0_52 = arith.constant 0 : index
    %c0_53 = arith.constant 0 : index
    %c0_54 = arith.constant 0 : index
    %149 = vector.load %arg13[%c0_52, %c0_53, %c0_54] : memref<1x1x32xf32, #tpu.memory_space<vmem>>, vector<1x1x32xf32>
    %150 = vector.shape_cast %149 : vector<1x1x32xf32> to vector<1x32xf32>
    %151 = vector.broadcast %150 : vector<1x32xf32> to vector<16x32xf32>
    %152 = arith.mulf %148, %151 : vector<16x32xf32>
    %c0_55 = arith.constant 0 : index
    %c0_56 = arith.constant 0 : index
    %c0_57 = arith.constant 0 : index
    %153 = vector.load %arg14[%c0_55, %c0_56, %c0_57] : memref<1x1x32xf32, #tpu.memory_space<vmem>>, vector<1x1x32xf32>
    %154 = vector.shape_cast %153 : vector<1x1x32xf32> to vector<1x32xf32>
    %155 = vector.broadcast %154 : vector<1x32xf32> to vector<16x32xf32>
    %156 = arith.addf %152, %155 : vector<16x32xf32>
    %157 = vector.shape_cast %156 : vector<16x32xf32> to vector<2x8x32xf32>
    %c0_58 = arith.constant 0 : index
    %c0_59 = arith.constant 0 : index
    %c0_60 = arith.constant 0 : index
    %158 = vector.load %arg15[%c0_58, %c0_59, %c0_60] : memref<2x8x32xf32, #tpu.memory_space<vmem>>, vector<2x8x32xf32>
    tpu.vector_store %arg15[%c0_58, %c0_59, %c0_60], %157 {strides = array<i32>} : memref<2x8x32xf32, #tpu.memory_space<vmem>>, vector<2x8x32xf32>,
    return
  }
  func.func @transform_0(%arg0: i32, %arg1: i32) -> (i32, i32, i32) {
    %c0_i32 = arith.constant 0 : i32
    %c0_i32_0 = arith.constant 0 : i32
    %c0_i32_1 = arith.constant 0 : i32
    return %arg0, %c0_i32, %c0_i32_0 : i32, i32, i32
  }
  func.func @transform_1(%arg0: i32, %arg1: i32) -> (i32, i32, i32) {
    %c0_i32 = arith.constant 0 : i32
    %c0_i32_0 = arith.constant 0 : i32
    %c0_i32_1 = arith.constant 0 : i32
    return %arg1, %c0_i32, %c0_i32_0 : i32, i32, i32
  }
  func.func @transform_2(%arg0: i32, %arg1: i32) -> (i32, i32, i32) {
    %c0_i32 = arith.constant 0 : i32
    %c0_i32_0 = arith.constant 0 : i32
    %c0_i32_1 = arith.constant 0 : i32
    return %arg1, %c0_i32, %c0_i32_0 : i32, i32, i32
  }
  func.func @transform_3(%arg0: i32, %arg1: i32) -> (i32, i32, i32) {
    %c0_i32 = arith.constant 0 : i32
    %c0_i32_0 = arith.constant 0 : i32
    %c0_i32_1 = arith.constant 0 : i32
    return %arg1, %c0_i32, %c0_i32_0 : i32, i32, i32
  }
  func.func @transform_4(%arg0: i32, %arg1: i32) -> (i32, i32, i32) {
    %c0_i32 = arith.constant 0 : i32
    %c0_i32_0 = arith.constant 0 : i32
    %c0_i32_1 = arith.constant 0 : i32
    return %arg1, %c0_i32, %c0_i32_0 : i32, i32, i32
  }
  func.func @transform_5(%arg0: i32, %arg1: i32) -> (i32, i32, i32) {
    %c0_i32 = arith.constant 0 : i32
    %c0_i32_0 = arith.constant 0 : i32
    %c0_i32_1 = arith.constant 0 : i32
    return %arg1, %c0_i32, %c0_i32_0 : i32, i32, i32
  }
  func.func @transform_6(%arg0: i32, %arg1: i32) -> (i32, i32, i32) {
    %c0_i32 = arith.constant 0 : i32
    %c0_i32_0 = arith.constant 0 : i32
    %c0_i32_1 = arith.constant 0 : i32
    return %arg1, %c0_i32, %c0_i32_0 : i32, i32, i32
  }
  func.func @transform_7(%arg0: i32, %arg1: i32) -> (i32, i32, i32) {
    %c0_i32 = arith.constant 0 : i32
    %c0_i32_0 = arith.constant 0 : i32
    %c0_i32_1 = arith.constant 0 : i32
    return %arg1, %c0_i32, %c0_i32_0 : i32, i32, i32
  }
  func.func @transform_8(%arg0: i32, %arg1: i32) -> (i32, i32, i32) {
    %c0_i32 = arith.constant 0 : i32
    %c0_i32_0 = arith.constant 0 : i32
    %c0_i32_1 = arith.constant 0 : i32
    return %arg1, %c0_i32, %c0_i32_0 : i32, i32, i32
  }
  func.func @transform_9(%arg0: i32, %arg1: i32) -> (i32, i32, i32) {
    %c0_i32 = arith.constant 0 : i32
    %c0_i32_0 = arith.constant 0 : i32
    %c0_i32_1 = arith.constant 0 : i32
    return %arg1, %c0_i32, %c0_i32_0 : i32, i32, i32
  }
  func.func @transform_10(%arg0: i32, %arg1: i32) -> (i32, i32, i32) {
    %c0_i32 = arith.constant 0 : i32
    %c0_i32_0 = arith.constant 0 : i32
    %c0_i32_1 = arith.constant 0 : i32
    return %arg1, %c0_i32, %c0_i32_0 : i32, i32, i32
  }
  func.func @transform_11(%arg0: i32, %arg1: i32) -> (i32, i32, i32) {
    %c0_i32 = arith.constant 0 : i32
    %c0_i32_0 = arith.constant 0 : i32
    %c0_i32_1 = arith.constant 0 : i32
    return %arg1, %c0_i32, %c0_i32_0 : i32, i32, i32
  }
  func.func @transform_12(%arg0: i32, %arg1: i32) -> (i32, i32, i32) {
    %c0_i32 = arith.constant 0 : i32
    %c0_i32_0 = arith.constant 0 : i32
    %c0_i32_1 = arith.constant 0 : i32
    return %arg1, %c0_i32, %c0_i32_0 : i32, i32, i32
  }
  func.func @transform_13(%arg0: i32, %arg1: i32) -> (i32, i32, i32) {
    %c0_i32 = arith.constant 0 : i32
    %c0_i32_0 = arith.constant 0 : i32
    %c0_i32_1 = arith.constant 0 : i32
    return %arg0, %c0_i32, %c0_i32_0 : i32, i32, i32
  }
}

</mosaic_0001>

<bundles_post_ra>
// kernel: vocab_encoder_forward.1
= control target key start
LH: loop header
LB: loop body
LE: loop exit
PB: predicated region body
PF: predicated region fallthrough
CT: control target
= control target key end

     0   :  { %s4537_s25 = smov 0   ;;  %s4539_s26 = smov 0   ;;  %s5147_s0 = inlined_call_operand.vmem [shape: f32[2,8,32], index: 0, kind: input, shape index: {}]   ;;  %s5148_s1 = inlined_call_operand.vmem [shape: f32[2,32,96], index: 1, kind: input, shape index: {}]   ;;  %s5149_s2 = inlined_call_operand.vmem [shape: f32[2,1,96], index: 2, kind: input, shape index: {}]   ;;  %s5150_s3 = inlined_call_operand.vmem [shape: f32[2,32,32], index: 3, kind: input, shape index: {}]   ;;  %s5151_s4 = inlined_call_operand.vmem [shape: f32[2,1,32], index: 4, kind: input, shape index: {}]   ;;  %s5152_s5 = inlined_call_operand.vmem [shape: f32[2,1,32], index: 5, kind: input, shape index: {}]   ;;  %s5153_s6 = inlined_call_operand.vmem [shape: f32[2,1,32], index: 6, kind: input, shape index: {}]   ;;  %s5154_s7 = inlined_call_operand.vmem [shape: bf16[2,32,2048], index: 7, kind: input, shape index: {}]   ;;  %s5155_s8 = inlined_call_operand.vmem [shape: f32[2,1,2048], index: 8, kind: input, shape index: {}]   ;;  %s5156_s9 = inlined_call_operand.vmem [shape: bf16[2,2048,32], index: 9, kind: input, shape index: {}]   ;;  %s5157_s10 = inlined_call_operand.vmem [shape: f32[2,1,32], index: 10, kind: input, shape index: {}]   ;;  %s5158_s11 = inlined_call_operand.vmem [shape: f32[2,1,32], index: 11, kind: input, shape index: {}]   ;;  %s5159_s12 = inlined_call_operand.vmem [shape: f32[2,1,32], index: 12, kind: input, shape index: {}]   ;;  %s5160_s13 = inlined_call_operand.vmem [shape: f32[2,8,32], index: 13, kind: output, shape index: {}]  }
   0x1   :  { %5166 = sst [smem:[#allocation5_spill]] %s5147_s0  ;;  %s4541_s27 = smov 0  }
   0x2   :  { %5167 = sst [smem:[#allocation6_spill]] %s5148_s1 }
   0x3   :  { %5168 = sst [smem:[#allocation7_spill]] %s5150_s3 }
   0x4   :  { %5169 = sst [smem:[#allocation8_spill]] %s5154_s7 }
   0x5   :  { %5170 = sst [smem:[#allocation9_spill]] %s5160_s13 }
   0x6 LB: > { %5171 = sst [smem:[#allocation2_spill]] %s4452_s26  ;;  %s32_s28 = sadd.s32 1, %s4452_s26  ;;  %s4456_s27 = sphi %s4541_s27, %s23_s27   ;;  %s4452_s26 = sphi %s4539_s26, %s5190_s26   ;;  %s4448_s25 = sphi %s4537_s25, %s5189_s25  }
   0x7   : > { %5172 = sst [smem:[#allocation3_spill]] %s4456_s27  ;;  %p3474_p0 = scmp.ge.s32.totalorder %s4456_s27, 1 }
   0x8   : > { %p33_p1 = scmp.ge.s32.totalorder %s32_s28, 2  ;;  %p505_p2 = scmp.lt.s32.totalorder %s4456_s27, 3 }
   0xa   : > { %s5192_s28 = smov (%p33_p1, %s32_s28), 0  ;;  %p506_p3 = pnand %p3474_p0, %p505_p2 }
   0xb   : > { %5173 = sst [smem:[#allocation4_spill]] %s5192_s28  ;;  %p600_p4 = scmp.lt.s32.totalorder (!%p506_p3), %s4448_s25, 1 }
   0xc   : > { %509 = sbr.rel (%p506_p3) target bundleno = 2115 (0x843), region = 72  ;;  %s5174_s1 = sld [smem:[#allocation6_spill]] (!%p506_p3) }
   0xd   : > { %s5175_s3 = sld [smem:[#allocation7_spill]] (!%p506_p3)  ;;  %p3484_p5 = scmp.ne.s32.totalorder (!%p506_p3), %s4448_s25, 0 }
   0xe   : > { %s5176_s7 = sld [smem:[#allocation8_spill]] (!%p506_p3) }
  0x11   : > { %s4555_s29 = scalar_select %p600_p4, %s4448_s25, 1 }
  0x12   : > { %s5178_s14 = sld [smem:[#allocation9_spill]] (!%p3484_p5) }
  0x13   : > { %s4173_s30 = sshll.u32 %s4555_s29, 5  ;;  %s4175_s16 = sshll.u32 %s4555_s29, 8 }
  0x14   : > { %s604_s19 = scalar_lea.vmem %s5174_s1, %s4173_s30  ;;  %s4568_s22 = scalar_lea.vmem %s5175_s3, %s4173_s30 }
  0x15   : > { %s4586_s1 = scalar_lea.vmem %s5176_s7, %s4175_s16  ;;  %s3481_s30 = sshll.u32 %s4555_s29, 4 }
  0x16   : > { %s4592_s23 = scalar_lea.vmem %s5155_s8, %s3481_s30  ;;  %s4176_s24 = sshll.u32 %s4555_s29, 10 }
  0x17   : > { %s4598_s27 = scalar_lea.vmem %s5156_s9, %s4176_s24  ;;  %s638_s15 = scalar_lea.vmem %s5157_s10, %s4555_s29 }
  0x18   : > { %s641_s16 = scalar_lea.vmem %s5158_s11, %s4555_s29  ;;  %s644_s20 = scalar_lea.vmem %s5159_s12, %s4555_s29 }
  0x19   : > { %655 = sbr.rel (%p3484_p5) target bundleno = 34 (0x22), region = 76  ;;  %s5177_s7 = sld [smem:[#allocation5_spill]] (!%p3484_p5) }
  0x1e   : > { %vm658_vm0 = vcmask 261120  }
  0x1f   : > { %v656_v0 = vld [vmem:[%s5177_s7] sm:$0xff]  ;;  %v657_v1 = vld [vmem:[%s5177_s7 + $0x8] sm:$0xff] }
  0x20   : > { %659 = vst.msk [vmem:[%s5178_s14] sm:$0xff] %vm658_vm0, %v656_v0 }
  0x21   : > { %660 = vst.msk [vmem:[%s5178_s14 + $0x8] sm:$0xff] %vm658_vm0, %v657_v1 }
  0x22 PF: > { %v666_v2 = vld [vmem:[%s604_s19 + $0x18] sm:$0xff]  ;;  %v665_v3 = vld [vmem:[%s604_s19 + $0x10] sm:$0xff]  ;;  %v664_v4 = vld [vmem:[%s604_s19 + $0x8] sm:$0xff]  ;;  %s5179_s18 = sld [smem:[#allocation9_spill]]  ;;  %vm671_vm1 = vcmask 261120   ;;  %s5180_s24 = scalar_lea.vmem %s5149_s2, %s4555_s29  ;;  %vm717_vm2 = vcmask 64512  }
  0x23   : > { %690 = vmatpush.msra.mxu0 %v666_v2  ;;  %v663_v5 = vld [vmem:[%s604_s19] sm:$0xff]  ;;  %s4458_s26 = smov 104   ;;  %s4459_s0 = smov 112  }
  0x24   : > { %v4385_v8 = vld [vmem:[%s5180_s24] ss:$0 sm:$0xff]  ;;  %s4460_s14 = smov 120   ;;  %s4461_s13 = smov 96  }
  0x25   : > { %691 = vmatpush.msra.mxu0 %v665_v3  ;;  %s4462_s17 = smov 64   ;;  %s4463_s3 = smov 16  }
  0x26   : > { %s4464_s25 = smov 8   ;;  %s4465_s30 = smov 24  }
  0x27   : > { %692 = vmatpush.msra.mxu0 %v664_v4  ;;  %s5185_s19 = scalar_lea.vmem %s5151_s4, %s4555_s29 }
  0x28   : > { %v4627_v6 = vld [vmem:[%s5179_s18] sm:$0xff]  ;;  %v4634_v7 = vld [vmem:[%s5179_s18 + $0x8] sm:$0xff] }
  0x29   : > { %693 = vmatpush.msra.mxu0 %v663_v5 }
  0x2a   : > { %3485 = vmatmul.msk.f32.vlgmr.msra.gmra.mxu0 %vm671_vm1, %v4627_v6 }
  0x32   : > { %3486 = vmatmul.msk.f32.gmra.mxu0 %vm671_vm1, %v4634_v7 }
  0xa7   : > { %v695_v9 = vpop.f32.mrf.mxu0 }
  0xa8   : > { %v4643_v10 = vadd.f32 %v4385_v8, %v695_v9 }
  0xaa   : > { %711 = vrot.lane.b32.xlu2 %v4643_v10, %s4458_s26  ;;  %707 = vrot.lane.b32.xlu0 %v4643_v10, %s4459_s0 }
  0xaf   : > { %v698_v11 = vpop.f32.mrf.mxu0 }
  0xb0   : > { %v4647_v12 = vadd.f32 %v4385_v8, %v698_v11 }
  0xb2   : > { %705 = vrot.lane.b32.xlu1 %v4647_v12, %s4460_s14  ;;  %709 = vrot.lane.b32.xlu2 %v4647_v12, %s4459_s0 }
  0xb3   : > { %703 = vrot.lane.b32.xlu0 %v4643_v10, %s4460_s14 }
  0xba   : > { %713 = vrot.lane.b32.xlu1 %v4647_v12, %s4458_s26  ;;  %s5186_s26 = scalar_lea.vmem %s5152_s5, %s4555_s29 }
  0xbb   : > { %742 = vrot.lane.b32.xlu0 %v4647_v12, %s4461_s13 }
  0xc2   : > { %715 = vrot.lane.b32.xlu1 %v4643_v10, %s4461_s13 }
 0x104   : > { %v4658_v14 = vpop.permute.xlu2 %711 }
 0x10c   : > { %v4663_v17 = vpop.permute.xlu2 %709 }
 0x11c   : > { %v4655_v13 = vpop.permute.xlu0 %707 }
 0x11d   : > { %820 = vrot.lane.b32.xlu2 %v4655_v13, %s4461_s13 }
 0x124   : > { %v4660_v15 = vpop.permute.xlu1 %705 }
 0x125   : > { %v704_v16 = vpop.permute.xlu0 %703  ;;  %794 = vrot.lane.b32.xlu1 %v4660_v15, %s4461_s13  ;;  %v4375_v57 = vpack.i.bf16 %v4660_v15, %v4655_v13 }
 0x126   : > { %768 = vrot.lane.b32.xlu0 %v704_v16, %s4461_s13  ;;  %v4370_v47 = vpack.i.bf16 %v704_v16, %v4643_v10 }
 0x12c   : > { %v4665_v18 = vpop.permute.xlu1 %713 }
 0x12d   : > { %v743_v19 = vpop.permute.xlu0 %742  ;;  %846 = vrot.lane.b32.xlu1 %v4663_v17, %s4461_s13  ;;  %898 = vrot.lane.b32.xlu2 %v4665_v18, %s4461_s13 }
 0x12e   : > { %872 = vrot.lane.b32.xlu0 %v4658_v14, %s4461_s13  ;;  %3489 = vmatpush.xpose.msk.msra.mxu2 %vm717_vm2, %v743_v19  ;;  %s5187_s13 = scalar_lea.vmem %s5153_s6, %s4555_s29 }
 0x131   : > { %3490 = vmatmul.msk.f32.vlgmr.msra.gmra.mxu2 %vm717_vm2, %v4647_v12 }
 0x134   : > { %v716_v20 = vpop.permute.xlu1 %715 }
 0x135   : > { %3487 = vmatpush.xpose.msk.msra.mxu1 %vm717_vm2, %v716_v20 }
 0x138   : > { %3488 = vmatmul.msk.f32.vlgmr.msra.gmra.mxu1 %vm717_vm2, %v4643_v10 }
 0x177   : > { %v821_v21 = vpop.permute.xlu2 %820 }
 0x178   : > { %3495 = vmatpush.xpose.msk.msrb.mxu2 %vm717_vm2, %v821_v21 }
 0x17b   : > { %3496 = vmatmul.msk.f32.vlgmr.msrb.gmra.mxu2 %vm717_vm2, %v4655_v13 }
 0x187   : > { %v899_v22 = vpop.permute.xlu2 %898 }
 0x188   : > { %3501 = vmatpush.xpose.msk.msra.mxu2 %vm717_vm2, %v899_v22 }
 0x18b   : > { %3502 = vmatmul.msk.f32.vlgmr.msra.gmra.mxu2 %vm717_vm2, %v4665_v18 }
 0x197   : > { %v795_v23 = vpop.permute.xlu1 %794 }
 0x198   : > { %v769_v24 = vpop.permute.xlu0 %768  ;;  %3493 = vmatpush.xpose.msk.msrb.mxu1 %vm717_vm2, %v795_v23 }
 0x199   : > { %3491 = vmatpush.xpose.msk.msrb.mxu0 %vm717_vm2, %v769_v24 }
 0x19b   : > { %3494 = vmatmul.msk.f32.vlgmr.msrb.gmra.mxu1 %vm717_vm2, %v4660_v15 }
 0x19c   : > { %3492 = vmatmul.msk.f32.vlgmr.msrb.gmra.mxu0 %vm717_vm2, %v704_v16 }
 0x19f   : > { %v847_v25 = vpop.permute.xlu1 %846 }
 0x1a0   : > { %v873_v26 = vpop.permute.xlu0 %872  ;;  %3497 = vmatpush.xpose.msk.msra.mxu3 %vm717_vm2, %v847_v25 }
 0x1a1   : > { %3499 = vmatpush.xpose.msk.msra.mxu1 %vm717_vm2, %v873_v26 }
 0x1a3   : > { %3498 = vmatmul.msk.f32.vlgmr.msra.gmra.mxu3 %vm717_vm2, %v4663_v17 }
 0x1a4   : > { %3500 = vmatmul.msk.f32.vlgmr.msra.gmra.mxu1 %vm717_vm2, %v4658_v14 }
 0x1b4   : > { %v765_v30 = vpop.f32.mrf.mxu2 }
 0x1b5   : > { %v739_v27 = vpop.f32.mrf.mxu1  ;;  %v925_v43 = vmul.f32 0.35355338, %v765_v30 }
 0x1b6   : > { %v924_v28 = vmul.f32 0.35355338, %v739_v27 }
 0x1b7   : > { %v935_v44 = vsel %vm717_vm2, %v925_v43, -inf }
 0x1b8   : > { %v932_v29 = vsel %vm717_vm2, %v924_v28, -inf }
 0x1b9   : > { %933 = vmax.xlane.f32.xlu2 %v932_v29 }
 0x1fe   : > { %v843_v31 = vpop.f32.mrf.mxu2 }
 0x1ff   : > { %v928_v32 = vmul.f32 0.35355338, %v843_v31 }
 0x201   : > { %v944_v33 = vsel %vm717_vm2, %v928_v32, -inf }
 0x202   : > { %945 = vmax.xlane.f32.xlu1 %v944_v33 }
 0x20e   : > { %v921_v34 = vpop.f32.mrf.mxu2 }
 0x20f   : > { %v931_v35 = vmul.f32 0.35355338, %v921_v34 }
 0x211   : > { %v953_v36 = vsel %vm717_vm2, %v931_v35, -inf }
 0x212   : > { %954 = vmax.xlane.f32.xlu1 %v953_v36 }
 0x218   : > { %v817_v37 = vpop.f32.mrf.mxu1 }
 0x219   : > { %v791_v38 = vpop.f32.mrf.mxu0  ;;  %v927_v39 = vmul.f32 0.35355338, %v817_v37 }
 0x21a   : > { %v926_v40 = vmul.f32 0.35355338, %v791_v38 }
 0x21b   : > { %v941_v41 = vsel %vm717_vm2, %v927_v39, -inf }
 0x21c   : > { %942 = vmax.xlane.f32.xlu2 %v941_v41  ;;  %v938_v42 = vsel %vm717_vm2, %v926_v40, -inf }
 0x21d   : > { %939 = vmax.xlane.f32.xlu0 %v938_v42 }
 0x221   : > { %v895_v54 = vpop.f32.mrf.mxu1 }
 0x222   : > { %v930_v55 = vmul.f32 0.35355338, %v895_v54 }
 0x224   : > { %936 = vmax.xlane.f32.xlu2 %v935_v44  ;;  %v950_v56 = vsel %vm717_vm2, %v930_v55, -inf }
 0x226   : > { %v869_v45 = vpop.f32.mrf.mxu3 }
 0x227   : > { %v929_v46 = vmul.f32 0.35355338, %v869_v45 }
 0x229   : > { %v947_v48 = vsel %vm717_vm2, %v929_v46, -inf }
 0x22b   : > { %4371 = vrot.lane.b32.xlu1 %v4370_v47, %s4462_s17 }
 0x22c   : > { %v934_v49 = vpop.xlane.xlu2 %933  ;;  %948 = vmax.xlane.f32.xlu2 %v947_v48 }
 0x22d   : > { %v956_v50 = vsub.f32 %v924_v28, %v934_v49 }
 0x22f   : > { %v964_v51 = vmul.f32 1.442695, %v956_v50 }
 0x231   : > { %4392 = vpow2.f32 %v964_v51 }
 0x237   : > { %v4702_v52 = vpop.eup %4392 }
 0x238   : > { %v980_v53 = vsel %vm717_vm2, %v4702_v52, 0.0 }
 0x239   : > { %981 = vadd.xlane.f32.xlu0 %v980_v53  ;;  %v4380_v53 = vpack.i.bf16 %v4658_v14, %v4647_v12 }
 0x241   : > { %951 = vmax.xlane.f32.xlu0 %v950_v56 }
 0x255   : > { %4376 = vrot.lane.b32.xlu0 %v4375_v57, %s4462_s17 }
 0x275   : > { %v946_v58 = vpop.xlane.xlu1 %945 }
 0x276   : > { %v960_v59 = vsub.f32 %v928_v32, %v946_v58 }
 0x278   : > { %v972_v60 = vmul.f32 1.442695, %v960_v59 }
 0x27a   : > { %4394 = vpow2.f32 %v972_v60 }
 0x280   : > { %v4710_v61 = vpop.eup %4394 }
 0x281   : > { %v992_v62 = vsel %vm717_vm2, %v4710_v61, 0.0 }
 0x282   : > { %993 = vadd.xlane.f32.xlu2 %v992_v62 }
 0x285   : > { %v955_v63 = vpop.xlane.xlu1 %954 }
 0x286   : > { %v963_v2 = vsub.f32 %v931_v35, %v955_v63 }
 0x288   : > { %v978_v4 = vmul.f32 1.442695, %v963_v2 }
 0x28f   : > { %v943_v0 = vpop.xlane.xlu2 %942 }
 0x290   : > { %v959_v1 = vsub.f32 %v927_v39, %v943_v0  ;;  %v940_v5 = vpop.xlane.xlu0 %939 }
 0x291   : > { %v958_v11 = vsub.f32 %v926_v40, %v940_v5 }
 0x292   : > { %v970_v3 = vmul.f32 1.442695, %v959_v1 }
 0x293   : > { %v968_v19 = vmul.f32 1.442695, %v958_v11 }
 0x294   : > { %4396 = vpow2.f32 %v970_v3 }
 0x295   : > { %4398 = vpow2.f32 %v978_v4 }
 0x297   : > { %v937_v8 = vpop.xlane.xlu2 %936 }
 0x298   : > { %v957_v9 = vsub.f32 %v925_v43, %v937_v8 }
 0x29a   : > { %v4714_v10 = vpop.eup %4396  ;;  %v966_v13 = vmul.f32 1.442695, %v957_v9 }
 0x29b   : > { %v989_v15 = vsel %vm717_vm2, %v4714_v10, 0.0  ;;  %v4718_v23 = vpop.eup %4398 }
 0x29c   : > { %4400 = vpow2.f32 %v966_v13  ;;  %990 = vadd.xlane.f32.xlu0 %v989_v15  ;;  %v1001_v28 = vsel %vm717_vm2, %v4718_v23, 0.0 }
 0x29d   : > { %v4372_v16 = vpop.permute.xlu1 %4371  ;;  %4402 = vpow2.f32 %v968_v19 }
 0x29e   : > { %v4374_v20 = vunpack.i.h.bf16 %v4372_v16  ;;  %v4373_v21 = vunpack.i.l.bf16 %v4372_v16 }
 0x29f   : > { %v949_v22 = vpop.xlane.xlu2 %948 }
 0x2a0   : > { %v961_v24 = vsub.f32 %v929_v46, %v949_v22  ;;  %1145 = vmatpush.msrb.mxu3 %v4373_v21  ;;  %1197 = vmatpush.msrb.mxu1 %v4374_v20 }
 0x2a2   : > { %v4720_v25 = vpop.eup %4400  ;;  %v974_v26 = vmul.f32 1.442695, %v961_v24 }
 0x2a3   : > { %v983_v27 = vsel %vm717_vm2, %v4720_v25, 0.0  ;;  %v4726_v29 = vpop.eup %4402 }
 0x2a4   : > { %4404 = vpow2.f32 %v974_v26  ;;  %984 = vadd.xlane.f32.xlu1 %v983_v27  ;;  %1002 = vadd.xlane.f32.xlu0 %v1001_v28  ;;  %v986_v32 = vsel %vm717_vm2, %v4726_v29, 0.0 }
 0x2aa   : > { %v4728_v30 = vpop.eup %4404 }
 0x2ab   : > { %v995_v31 = vsel %vm717_vm2, %v4728_v30, 0.0 }
 0x2ac   : > { %996 = vadd.xlane.f32.xlu2 %v995_v31  ;;  %987 = vadd.xlane.f32.xlu1 %v986_v32  ;;  %v982_v33 = vpop.xlane.xlu0 %981 }
 0x2ad   : > { %4406 = vrcp.f32 %v982_v33  ;;  %v1015_v39 = vand.u32 2147483648, %v982_v33  ;;  %v1013_v42 = vand.u32 2147483647, %v982_v33  ;;  %vm1009_vm4 = vweird.f32 %v982_v33 }
 0x2af   : > { %v1016_v44 = vor.u32 1.1754944e-38, %v1015_v39  ;;  %vm1014_vm6 = vcmp.eq.f32.partialorder %v1013_v42, 8.507059e+37 }
 0x2b3   : > { %v4407_v34 = vpop.eup %4406 }
 0x2b4   : > { %v1005_v35 = vmul.f32 %v4407_v34, %v982_v33  ;;  %v952_v36 = vpop.xlane.xlu0 %951  ;;  %vm1010_vm3 = vweird.f32 %v4407_v34 }
 0x2b5   : > { %v962_v37 = vsub.f32 %v930_v55, %v952_v36  ;;  %vm1011_vm5 = vmor %vm1009_vm4, %vm1010_vm3 }
 0x2b6   : > { %v1006_v38 = vsub.f32 1.0, %v1005_v35 }
 0x2b7   : > { %v976_v40 = vmul.f32 1.442695, %v962_v37 }
 0x2b8   : > { %v1007_v41 = vmul.f32 %v4407_v34, %v1006_v38  ;;  %1254 = vrot.lane.b32.xlu0 %v4663_v17, %s4462_s17 }
 0x2b9   : > { %4408 = vpow2.f32 %v976_v40 }
 0x2ba   : > { %v1008_v43 = vadd.f32 %v4407_v34, %v1007_v41 }
 0x2bc   : > { %v1012_v45 = vsel %vm1011_vm5, %v4407_v34, %v1008_v43 }
 0x2bd   : > { %v1017_v46 = vsel %vm1014_vm6, %v1016_v44, %v1012_v45 }
 0x2be   : > { %v1018_v47 = vmul.f32 %v4702_v52, %v1017_v46 }
 0x2bf   : > { %v4737_v48 = vpop.eup %4408 }
 0x2c0   : > { %3503 = vmatmul.msk.f32.vlgmr.msrb.gmra.mxu3 %vm717_vm2, %v1018_v47  ;;  %v998_v49 = vsel %vm717_vm2, %v4737_v48, 0.0 }
 0x2c1   : > { %999 = vadd.xlane.f32.xlu2 %v998_v49 }
 0x2c5   : > { %1306 = vrot.lane.b32.xlu1 %v4665_v18, %s4462_s17 }
 0x2c7   : > { %v4377_v17 = vpop.permute.xlu0 %4376 }
 0x2c8   : > { %v4379_v50 = vunpack.i.h.bf16 %v4377_v17  ;;  %v4378_v51 = vunpack.i.l.bf16 %v4377_v17 }
 0x2ca   : > { %1223 = vmatpush.msrb.mxu2 %v4379_v50  ;;  %1249 = vmatpush.msra.mxu3 %v4378_v51 }
 0x2d9   : > { %4381 = vrot.lane.b32.xlu2 %v4380_v53, %s4462_s17 }
 0x2f5   : > { %v994_v52 = vpop.xlane.xlu2 %993 }
 0x2f6   : > { %4410 = vrcp.f32 %v994_v52  ;;  %v1075_v57 = vand.u32 2147483648, %v994_v52  ;;  %v1073_v59 = vand.u32 2147483647, %v994_v52  ;;  %vm1069_vm8 = vweird.f32 %v994_v52 }
 0x2f8   : > { %v1076_v60 = vor.u32 1.1754944e-38, %v1075_v57  ;;  %vm1074_vm10 = vcmp.eq.f32.partialorder %v1073_v59, 8.507059e+37 }
 0x2fc   : > { %v4411_v54 = vpop.eup %4410 }
 0x2fd   : > { %v1065_v55 = vmul.f32 %v4411_v54, %v994_v52  ;;  %vm1070_vm7 = vweird.f32 %v4411_v54 }
 0x2fe   : > { %vm1071_vm9 = vmor %vm1069_vm8, %vm1070_vm7 }
 0x2ff   : > { %v1066_v56 = vsub.f32 1.0, %v1065_v55 }
 0x301   : > { %v1067_v58 = vmul.f32 %v4411_v54, %v1066_v56 }
 0x303   : > { %v1068_v18 = vadd.f32 %v4411_v54, %v1067_v58 }
 0x305   : > { %v1072_v62 = vsel %vm1071_vm9, %v4411_v54, %v1068_v18 }
 0x306   : > { %v1077_v63 = vsel %vm1074_vm10, %v1076_v60, %v1072_v62 }
 0x307   : > { %v1078_v12 = vmul.f32 %v4710_v61, %v1077_v63 }
 0x309   : > { %3507 = vmatmul.msk.f32.vlgmr.msra.gmra.mxu3 %vm717_vm2, %v1078_v12 }
 0x30f   : > { %v991_v14 = vpop.xlane.xlu0 %990 }
 0x310   : > { %4412 = vrcp.f32 %v991_v14  ;;  %v1060_v8 = vand.u32 2147483648, %v991_v14  ;;  %v1058_v9 = vand.u32 2147483647, %v991_v14  ;;  %vm1054_vm12 = vweird.f32 %v991_v14 }
 0x312   : > { %v1061_v15 = vor.u32 1.1754944e-38, %v1060_v8  ;;  %vm1059_vm14 = vcmp.eq.f32.partialorder %v1058_v9, 8.507059e+37 }
 0x316   : > { %v4413_v0 = vpop.eup %4412 }
 0x317   : > { %v1050_v1 = vmul.f32 %v4413_v0, %v991_v14  ;;  %v4749_v2 = vpop.xlane.xlu1 %984  ;;  %v1003_v3 = vpop.xlane.xlu0 %1002  ;;  %vm1055_vm11 = vweird.f32 %v4413_v0 }
 0x318   : > { %4414 = vrcp.f32 %v1003_v3  ;;  %vm1056_vm13 = vmor %vm1054_vm12, %vm1055_vm11  ;;  %vm1114_vm3 = vweird.f32 %v1003_v3  ;;  %v1120_v39 = vand.u32 2147483648, %v1003_v3  ;;  %v1118_v41 = vand.u32 2147483647, %v1003_v3 }
 0x319   : > { %v1051_v4 = vsub.f32 1.0, %v1050_v1  ;;  %4416 = vrcp.f32 %v4749_v2  ;;  %v1030_v55 = vand.u32 2147483648, %v4749_v2  ;;  %vm1024_vm10 = vweird.f32 %v4749_v2 }
 0x31a   : > { %v1121_v49 = vor.u32 1.1754944e-38, %v1120_v39  ;;  %vm1119_vm8 = vcmp.eq.f32.partialorder %v1118_v41, 8.507059e+37  ;;  %v1028_v56 = vand.u32 2147483647, %v4749_v2 }
 0x31b   : > { %v1052_v5 = vmul.f32 %v4413_v0, %v1051_v4  ;;  %v1031_v18 = vor.u32 1.1754944e-38, %v1030_v55 }
 0x31c   : > { %vm1029_vm12 = vcmp.eq.f32.partialorder %v1028_v56, 8.507059e+37 }
 0x31d   : > { %v1053_v11 = vadd.f32 %v4413_v0, %v1052_v5 }
 0x31e   : > { %v4415_v13 = vpop.eup %4414 }
 0x31f   : > { %v1057_v61 = vsel %vm1056_vm13, %v4413_v0, %v1053_v11  ;;  %v988_v16 = vpop.xlane.xlu1 %987  ;;  %v1110_v20 = vmul.f32 %v4415_v13, %v1003_v3  ;;  %v4752_v21 = vpop.xlane.xlu2 %996  ;;  %vm1115_vm15 = vweird.f32 %v4415_v13 }
 0x320   : > { %v1062_v19 = vsel %vm1059_vm14, %v1061_v15, %v1057_v61  ;;  %4418 = vrcp.f32 %v988_v16  ;;  %v4417_v24 = vpop.eup %4416  ;;  %v1045_v35 = vand.u32 2147483648, %v988_v16  ;;  %vm4760_vm4 = vmor %vm1114_vm3, %vm1115_vm15  ;;  %vm1039_vm5 = vweird.f32 %v988_v16 }
 0x321   : > { %v1063_v22 = vmul.f32 %v4714_v10, %v1062_v19  ;;  %v1111_v26 = vsub.f32 1.0, %v1110_v20  ;;  %4420 = vrcp.f32 %v4752_v21  ;;  %v1020_v28 = vmul.f32 %v4417_v24, %v4749_v2 }
 0x322   : > { %v1043_v10 = vand.u32 2147483647, %v988_v16  ;;  %v1046_v45 = vor.u32 1.1754944e-38, %v1045_v35  ;;  %vm1025_vm9 = vweird.f32 %v4417_v24  ;;  %v1090_v0 = vand.u32 2147483648, %v4752_v21  ;;  %v1366_v35 = vld [vmem:[%s4568_s22 + $0x10] sm:$0xff] }
 0x323   : > { %3506 = vmatmul.msk.f32.vlgmr.msrb.gmra.mxu2 %vm717_vm2, %v1063_v22  ;;  %v1112_v31 = vmul.f32 %v4415_v13, %v1111_v26  ;;  %v1021_v34 = vsub.f32 1.0, %v1020_v28  ;;  %vm1026_vm11 = vmor %vm1024_vm10, %vm1025_vm9  ;;  %vm1084_vm14 = vweird.f32 %v4752_v21  ;;  %v1088_v2 = vand.u32 2147483647, %v4752_v21 }
 0x324   : > { %vm1044_vm7 = vcmp.eq.f32.partialorder %v1043_v10, 8.507059e+37  ;;  %v1091_v15 = vor.u32 1.1754944e-38, %v1090_v0 }
 0x325   : > { %v1113_v37 = vadd.f32 %v4415_v13, %v1112_v31  ;;  %v1022_v43 = vmul.f32 %v4417_v24, %v1021_v34  ;;  %vm1089_vm3 = vcmp.eq.f32.partialorder %v1088_v2, 8.507059e+37  ;;  %v1367_v34 = vld [vmem:[%s4568_s22 + $0x18] sm:$0xff] }
 0x326   : > { %v4419_v27 = vpop.eup %4418  ;;  %1390 = vmatpush.msrb.mxu3 %v1367_v34  ;;  %v3517_v34 = vld [vmem:[%s4586_s1 + $0x40] sm:$0xf0] }
 0x327   : > { %v1035_v32 = vmul.f32 %v4419_v27, %v988_v16  ;;  %v4758_v36 = vpop.eup %4420  ;;  %vm1040_vm0 = vweird.f32 %v4419_v27  ;;  %v1117_v46 = vsel %vm4760_vm4, %v4415_v13, %v1113_v37  ;;  %v1023_v51 = vadd.f32 %v4417_v24, %v1022_v43  ;;  %v1364_v37 = vld [vmem:[%s4568_s22] sm:$0xff] }
 0x328   : > { %v1080_v44 = vmul.f32 %v4758_v36, %v4752_v21  ;;  %vm1041_vm6 = vmor %vm1039_vm5, %vm1040_vm0  ;;  %v1122_v53 = vsel %vm1119_vm8, %v1121_v49, %v1117_v46  ;;  %vm1085_vm13 = vweird.f32 %v4758_v36  ;;  %1391 = vmatpush.msrb.mxu3 %v1366_v35  ;;  %vm1361_vm8 = vcmask 195584   ;;  %v3523_v35 = vld [vmem:[%s4586_s1 + $0x8] sm:$0xf] }
 0x329   : > { %v1036_v33 = vsub.f32 1.0, %v1035_v32  ;;  %v1123_v58 = vmul.f32 %v4718_v23, %v1122_v53  ;;  %v1027_v59 = vsel %vm1026_vm11, %v4417_v24, %v1023_v51  ;;  %vm4782_vm15 = vmor %vm1084_vm14, %vm1085_vm13 }
 0x32a   : > { %v1081_v52 = vsub.f32 1.0, %v1080_v44  ;;  %v1032_v62 = vsel %vm1029_vm12, %v1031_v18, %v1027_v59  ;;  %v1255_v11 = vpop.permute.xlu0 %1254 }
 0x32b   : > { %v1037_v38 = vmul.f32 %v4419_v27, %v1036_v33  ;;  %v1033_v4 = vmul.f32 %v4720_v25, %v1032_v62 }
 0x32d   : > { %v1038_v42 = vadd.f32 %v4419_v27, %v1037_v38 }
 0x32f   : > { %v1042_v47 = vsel %vm1041_vm6, %v4419_v27, %v1038_v42 }
 0x330   : > { %v1047_v17 = vsel %vm1044_vm7, %v1046_v45, %v1042_v47  ;;  %vm1358_vm7 = vcmask 130048  }
 0x331   : > { %v1048_v50 = vmul.f32 %v4726_v29, %v1047_v17  ;;  %v1082_v29 = vmul.f32 %v4758_v36, %v1081_v52  ;;  %v4386_v17 = vld [vmem:[%s5185_s19] ss:$0 sm:$0xff] }
 0x333   : > { %3505 = vmatmul.msk.f32.vlgmr.msrb.gmra.mxu1 %vm717_vm2, %v1048_v50  ;;  %v1083_v63 = vadd.f32 %v4758_v36, %v1082_v29 }
 0x334   : > { %v1000_v54 = vpop.xlane.xlu2 %999 }
 0x335   : > { %4422 = vrcp.f32 %v1000_v54  ;;  %v1105_v8 = vand.u32 2147483648, %v1000_v54  ;;  %v1087_v9 = vsel %vm4782_vm15, %v4758_v36, %v1083_v63  ;;  %v1103_v61 = vand.u32 2147483647, %v1000_v54  ;;  %v1365_v36 = vld [vmem:[%s4568_s22 + $0x8] sm:$0xff] }
 0x336   : > { %vm1099_vm4 = vweird.f32 %v1000_v54  ;;  %v1092_v16 = vsel %vm1089_vm3, %v1091_v15, %v1087_v9  ;;  %1392 = vmatpush.msrb.mxu3 %v1365_v36  ;;  %v4186_v36 = vld [vmem:[%s4586_s1 + $0x44] sm:$0xf0] }
 0x337   : > { %v1307_v57 = vpop.permute.xlu1 %1306  ;;  %v1106_v19 = vor.u32 1.1754944e-38, %v1105_v8  ;;  %vm1104_vm6 = vcmp.eq.f32.partialorder %v1103_v61, 8.507059e+37  ;;  %v1093_v22 = vmul.f32 %v4728_v30, %v1092_v16  ;;  %v4193_v61 = vld [vmem:[%s4586_s1 + $0x84] sm:$0xf] }
 0x338   : > { %1327 = vmatpush.msra.mxu2 %v1307_v57  ;;  %1393 = vmatpush.msrb.mxu3 %v1364_v37  ;;  %v3581_v16 = vld [vmem:[%s4586_s1 + $0xc0] sm:$0xf0] }
 0x339   : > { %3510 = vmatmul.msk.f32.vlgmr.msra.gmra.mxu2 %vm717_vm2, %v1123_v58  ;;  %v4466_v58 = vmov 32.0  }
 0x33a   : > { %4424 = vrcp.f32 %v4466_v58  ;;  %v4187_v58 = vld [vmem:[%s4586_s1 + $0x4c] sm:$0xf0] }
 0x33b   : > { %v4423_v60 = vpop.eup %4422 }
 0x33c   : > { %v1095_v12 = vmul.f32 %v4423_v60, %v1000_v54  ;;  %v4382_v14 = vpop.permute.xlu2 %4381  ;;  %vm1100_vm0 = vweird.f32 %v4423_v60 }
 0x33d   : > { %v4384_v1 = vunpack.i.h.bf16 %v4382_v14  ;;  %v4383_v23 = vunpack.i.l.bf16 %v4382_v14  ;;  %vm1101_vm5 = vmor %vm1099_vm4, %vm1100_vm0 }
 0x33e   : > { %v1096_v3 = vsub.f32 1.0, %v1095_v12 }
 0x33f   : > { %1171 = vmatpush.msra.mxu0 %v4383_v23  ;;  %1301 = vmatpush.msra.mxu1 %v4384_v1 }
 0x340   : > { %v1097_v13 = vmul.f32 %v4423_v60, %v1096_v3  ;;  %3504 = vmatmul.msk.f32.vlgmr.msra.gmra.mxu0 %vm717_vm2, %v1033_v4  ;;  %v4425_v59 = vpop.eup %4424 }
 0x341   : > { %1275 = vmatpush.msrb.mxu0 %v1255_v11  ;;  %v1410_v29 = vmul.f32 32.0, %v4425_v59  ;;  %v3579_v11 = vld [vmem:[%s4586_s1 + $0x80] sm:$0xf] }
 0x342   : > { %v1098_v25 = vadd.f32 %v4423_v60, %v1097_v13  ;;  %v4201_v13 = vld [vmem:[%s4586_s1 + $0xbc] sm:$0xf0] }
 0x343   : > { %v1147_v26 = vpop.f32.mrf.mxu3  ;;  %v1411_v18 = vsub.f32 1.0, %v1410_v29  ;;  %v4179_v29 = vld [vmem:[%s4586_s1 + $0x14] sm:$0xf] }
 0x344   : > { %v1102_v20 = vsel %vm1101_vm5, %v4423_v60, %v1098_v25  ;;  %v3580_v25 = vor.u32 %v4201_v13, %v3579_v11 }
 0x345   : > { %v1107_v21 = vsel %vm1104_vm6, %v1106_v19, %v1102_v20  ;;  %v1412_v60 = vmul.f32 %v4425_v59, %v1411_v18  ;;  %v3587_v19 = vld [vmem:[%s4586_s1 + $0x88] sm:$0xf]  ;;  %v3533_v18 = vld [vmem:[%s4586_s1 + $0x50] sm:$0xf0] }
 0x346   : > { %v1108_v24 = vmul.f32 %v4737_v48, %v1107_v21  ;;  %v4202_v20 = vld [vmem:[%s4586_s1 + $0xc4] sm:$0xf0]  ;;  %1704 = vmatpush.bf16.msra.mxu0 %v3580_v25  ;;  %v4387_v25 = vld [vmem:[%s5186_s26] ss:$0 sm:$0xff] }
 0x347   : > { %v1413_v62 = vadd.f32 %v4425_v59, %v1412_v60  ;;  %v3539_v60 = vld [vmem:[%s4586_s1 + $0x18] sm:$0xf] }
 0x348   : > { %3508 = vmatmul.msk.f32.vlgmr.msrb.gmra.mxu0 %vm717_vm2, %v1093_v22  ;;  %3509 = vmatmul.msk.f32.vlgmr.msra.gmra.mxu1 %vm717_vm2, %v1108_v24  ;;  %v3584_v22 = vor.u32 %v4193_v61, %v3581_v16  ;;  %v3588_v24 = vor.u32 %v4202_v20, %v3587_v19  ;;  %v4388_v19 = vld [vmem:[%s5187_s13] ss:$0 sm:$0xff] }
 0x34a   : > { %1718 = vmatpush.bf16.msrb.mxu1 %v3584_v22  ;;  %1732 = vmatpush.bf16.msrb.mxu2 %v3588_v24  ;;  %v3611_v24 = vld [vmem:[%s4586_s1 + $0xa0] sm:$0xf] }
 0x38c   : > { %v1251_v27 = vpop.f32.mrf.mxu3 }
 0x38d   : > { %1342 = vrot.lane.b32.xlu0 %v1251_v27, %s4463_s3  ;;  %v3589_v27 = vld [vmem:[%s4586_s1 + $0xc8] sm:$0xf0] }
 0x3a6   : > { %v1225_v31 = vpop.f32.mrf.mxu2 }
 0x3b0   : > { %v1199_v28 = vpop.f32.mrf.mxu1 }
 0x3b1   : > { %1334 = vrot.lane.b32.xlu1 %v1199_v28, %s4464_s25 }
 0x3b9   : > { %1336 = vrot.lane.b32.xlu1 %v1225_v31, %s4464_s25 }
 0x3bc   : > { %v1329_v33 = vpop.f32.mrf.mxu2 }
 0x3bd   : > { %v1173_v30 = vpop.f32.mrf.mxu0 }
 0x3c5   : > { %v1277_v32 = vpop.f32.mrf.mxu0  ;;  %v1303_v48 = vpop.f32.mrf.mxu1 }
 0x3c6   : > { %1350 = vrot.lane.b32.xlu2 %v1303_v48, %s4465_s30  ;;  %1344 = vrot.lane.b32.xlu0 %v1277_v32, %s4463_s3  ;;  %v4185_v32 = vld [vmem:[%s4586_s1 + $0x3c] sm:$0xf0]  ;;  %v4177_v48 = vld [vmem:[%s4586_s1 + $0x4] sm:$0xf] }
 0x3c7   : > { %v3520_v37 = vor.u32 %v4177_v48, %v3517_v34  ;;  %v4198_v48 = vld [vmem:[%s4586_s1 + $0xac] sm:$0xf] }
 0x3c9   : > { %1719 = vmatpush.bf16.msrb.mxu1 %v3520_v37  ;;  %v4189_v37 = vld [vmem:[%s4586_s1 + $0x5c] sm:$0xf0] }
 0x3ce   : > { %1352 = vrot.lane.b32.xlu2 %v1329_v33, %s4465_s30 }
 0x3ff   : > { %v1343_v10 = vpop.permute.xlu0 %1342 }
 0x420   : > { %v1351_v40 = vpop.permute.xlu2 %1350 }
 0x423   : > { %v1335_v38 = vpop.permute.xlu1 %1334 }
 0x424   : > { %v1356_v39 = vsel %vm717_vm2, %v1147_v26, %v1335_v38  ;;  %v4194_v26 = vld [vmem:[%s4586_s1 + $0x8c] sm:$0xf]  ;;  %v3524_v38 = vor.u32 %v4186_v36, %v3523_v35  ;;  %v3547_v36 = vld [vmem:[%s4586_s1 + $0x20] sm:$0xf] }
 0x425   : > { %v1359_v41 = vsel %vm1358_vm7, %v1356_v39, %v1343_v10  ;;  %v3592_v28 = vor.u32 %v4194_v26, %v3589_v27  ;;  %v4178_v10 = vld [vmem:[%s4586_s1 + $0xc] sm:$0xf]  ;;  %v4197_v26 = vld [vmem:[%s4586_s1 + $0xa4] sm:$0xf] }
 0x426   : > { %v1362_v42 = vsel %vm1361_vm8, %v1359_v41, %v1351_v40  ;;  %v3525_v39 = vld [vmem:[%s4586_s1 + $0x48] sm:$0xf0]  ;;  %1733 = vmatpush.bf16.msrb.mxu2 %v3524_v38  ;;  %v3613_v27 = vld [vmem:[%s4586_s1 + $0xe0] sm:$0xf0] }
 0x427   : > { %3511 = vmatmul.msk.f32.vlgmr.msrb.gmra.mxu3 %vm671_vm1, %v1362_v42  ;;  %v3528_v40 = vor.u32 %v4178_v10, %v3525_v39  ;;  %v3616_v35 = vor.u32 %v4197_v26, %v3613_v27  ;;  %v4181_v39 = vld [vmem:[%s4586_s1 + $0x24] sm:$0xf] }
 0x428   : > { %v1353_v46 = vpop.permute.xlu2 %1352  ;;  %1746 = vmatpush.bf16.msra.mxu3 %v3592_v28  ;;  %v3619_v28 = vld [vmem:[%s4586_s1 + $0xa8] sm:$0xf]  ;;  %v4229_v26 = vld [vmem:[%s4598_s27 + $0xa0] sm:$0xff] }
 0x429   : > { %v4237_v27 = vld [vmem:[%s4598_s27 + $0xe0] sm:$0xff] }
 0x42b   : > { %v1337_v43 = vpop.permute.xlu1 %1336 }
 0x42c   : > { %v1357_v44 = vsel %vm717_vm2, %v1173_v30, %v1337_v43  ;;  %vm1414_vm2 = vweird.f32 %v4425_v59  ;;  %v3515_v30 = vld [vmem:[%s4586_s1] sm:$0xf]  ;;  %v3595_v43 = vld [vmem:[%s4586_s1 + $0x90] sm:$0xf]  ;;  %1747 = vmatpush.bf16.msra.mxu3 %v3528_v40  ;;  %v3549_v40 = vld [vmem:[%s4586_s1 + $0x60] sm:$0xf0] }
 0x42d   : > { %v4811_v63 = vsel %vm1414_vm2, %v4425_v59, %v1413_v62  ;;  %v3516_v33 = vor.u32 %v4185_v32, %v3515_v30  ;;  %v3536_v62 = vor.u32 %v4179_v29, %v3533_v18  ;;  %v4206_v32 = vld [vmem:[%s4586_s1 + $0xe4] sm:$0xf0]  ;;  %v4191_v29 = vld [vmem:[%s4586_s1 + $0x6c] sm:$0xf0] }
 0x42e   : > { %v3620_v38 = vor.u32 %v4206_v32, %v3619_v28  ;;  %v4212_v28 = vld [vmem:[%s4598_s27 + $0x18] sm:$0xff] }
 0x42f   : > { %1705 = vmatpush.bf16.msra.mxu0 %v3516_v33  ;;  %v4220_v32 = vld [vmem:[%s4598_s27 + $0x58] sm:$0xff] }
 0x438   : > { %v1345_v45 = vpop.permute.xlu0 %1344 }
 0x439   : > { %v1360_v47 = vsel %vm1358_vm7, %v1357_v44, %v1345_v45  ;;  %v4203_v44 = vld [vmem:[%s4586_s1 + $0xcc] sm:$0xf0] }
 0x43a   : > { %v1363_v49 = vsel %vm1361_vm8, %v1360_v47, %v1353_v46  ;;  %v3596_v46 = vor.u32 %v4203_v44, %v3595_v43  ;;  %v4195_v47 = vld [vmem:[%s4586_s1 + $0x94] sm:$0xf]  ;;  %v4182_v43 = vld [vmem:[%s4586_s1 + $0x2c] sm:$0xf] }
 0x43b   : > { %3512 = vmatmul.msk.f32.gmra.mxu3 %vm671_vm1, %v1363_v49  ;;  %v3597_v49 = vld [vmem:[%s4586_s1 + $0xd0] sm:$0xf0]  ;;  %v3557_v44 = vld [vmem:[%s4586_s1 + $0x68] sm:$0xf0] }
 0x43c   : > { %1760 = vmatpush.bf16.msrb.mxu0 %v3596_v46  ;;  %v3552_v46 = vor.u32 %v4181_v39, %v3549_v40  ;;  %v4234_v39 = vld [vmem:[%s4598_s27 + $0xc8] sm:$0xff]  ;;  %v4209_v40 = vld [vmem:[%s4598_s27] sm:$0xff] }
 0x4aa   : > { %v1395_v50 = vpop.f32.mrf.mxu3 }
 0x4ab   : > { %v1396_v51 = vadd.f32 %v4386_v17, %v1395_v50  ;;  %v3600_v50 = vor.u32 %v4195_v47, %v3597_v49  ;;  %v3560_v49 = vor.u32 %v4182_v43, %v3557_v44  ;;  %v4256_v43 = vld [vmem:[%s4598_s27 + $0x178] sm:$0xff]  ;;  %v4225_v44 = vld [vmem:[%s4598_s27 + $0x80] sm:$0xff] }
 0x4ad   : > { %v1401_v53 = vadd.f32 %v1396_v51, %v4627_v6  ;;  %v4204_v51 = vld [vmem:[%s4586_s1 + $0xd4] sm:$0xf0]  ;;  %1774 = vmatpush.bf16.msra.mxu1 %v3600_v50  ;;  %v4207_v50 = vld [vmem:[%s4586_s1 + $0xec] sm:$0xf0] }
 0x4af   : > { %v1403_v52 = vsel %vm671_vm1, %v1401_v53, 0.0 }
 0x4b0   : > { %1404 = vadd.xlane.f32.xlu1 %v1403_v52  ;;  %v3605_v52 = vld [vmem:[%s4586_s1 + $0xd8] sm:$0xf0] }
 0x4b1   : > { %1775 = vmatpush.bf16.msra.mxu1 %v3536_v62  ;;  %v4183_v62 = vld [vmem:[%s4586_s1 + $0x34] sm:$0xf] }
 0x4be   : > { %v1398_v54 = vpop.f32.mrf.mxu3 }
 0x4bf   : > { %v1399_v55 = vadd.f32 %v4386_v17, %v1398_v54  ;;  %v3603_v17 = vld [vmem:[%s4586_s1 + $0x98] sm:$0xf] }
 0x4c1   : > { %v1402_v56 = vadd.f32 %v1399_v55, %v4634_v7  ;;  %v3604_v55 = vor.u32 %v4204_v51, %v3603_v17  ;;  %v3627_v17 = vld [vmem:[%s4586_s1 + $0xb0] sm:$0xf]  ;;  %v4199_v51 = vld [vmem:[%s4586_s1 + $0xb4] sm:$0xf] }
 0x4c3   : > { %v1406_v57 = vsel %vm671_vm1, %v1402_v56, 0.0  ;;  %1788 = vmatpush.bf16.msra.mxu2 %v3604_v55  ;;  %v4200_v55 = vld [vmem:[%s4586_s1 + $0xbc] sm:$0xf] }
 0x4c4   : > { %1407 = vadd.xlane.f32.xlu0 %v1406_v57  ;;  %v3531_v57 = vld [vmem:[%s4586_s1 + $0x10] sm:$0xf] }
 0x4c5   : > { %v3532_v59 = vor.u32 %v4187_v58, %v3531_v57  ;;  %v3628_v57 = vor.u32 %v4207_v50, %v3627_v17  ;;  %v4255_v17 = vld [vmem:[%s4598_s27 + $0x170] sm:$0xff] }
 0x4c6   : > { %v4263_v50 = vld [vmem:[%s4598_s27 + $0x1b0] sm:$0xff] }
 0x4c7   : > { %1761 = vmatpush.bf16.msrb.mxu0 %v3532_v59  ;;  %v3563_v59 = vld [vmem:[%s4586_s1 + $0x30] sm:$0xf] }
 0x523   : > { %v1405_v6 = vpop.xlane.xlu1 %1404 }
 0x524   : > { %v1416_v12 = vmul.f32 %v4811_v63, %v1405_v6  ;;  %v4188_v6 = vld [vmem:[%s4586_s1 + $0x54] sm:$0xf0] }
 0x526   : > { %v4814_v14 = vsub.f32 %v1401_v53, %v1416_v12  ;;  %v4196_v53 = vld [vmem:[%s4586_s1 + $0x9c] sm:$0xf] }
 0x527   : > { %v4180_v12 = vld [vmem:[%s4586_s1 + $0x1c] sm:$0xf] }
 0x528   : > { %v1420_v7 = vmul.f32 %v4814_v14, %v4814_v14 }
 0x52a   : > { %v1422_v0 = vsel %vm671_vm1, %v1420_v7, 0.0  ;;  %v3541_v7 = vld [vmem:[%s4586_s1 + $0x58] sm:$0xf0] }
 0x52b   : > { %1423 = vadd.xlane.f32.xlu2 %v1422_v0  ;;  %v3540_v0 = vor.u32 %v4188_v6, %v3539_v60  ;;  %v3565_v6 = vld [vmem:[%s4586_s1 + $0x70] sm:$0xf0] }
 0x52d   : > { %1789 = vmatpush.bf16.msra.mxu2 %v3540_v0  ;;  %v4184_v0 = vld [vmem:[%s4586_s1 + $0x3c] sm:$0xf] }
 0x537   : > { %v1408_v1 = vpop.xlane.xlu0 %1407 }
 0x538   : > { %v1417_v23 = vmul.f32 %v4811_v63, %v1408_v1  ;;  %v3544_v1 = vor.u32 %v4180_v12, %v3541_v7  ;;  %v3571_v12 = vld [vmem:[%s4586_s1 + $0x38] sm:$0xf] }
 0x539   : > { %v4192_v7 = vld [vmem:[%s4586_s1 + $0x74] sm:$0xf0] }
 0x53a   : > { %v4820_v2 = vsub.f32 %v1402_v56, %v1417_v23  ;;  %v3608_v56 = vor.u32 %v4196_v53, %v3605_v52  ;;  %v3629_v53 = vld [vmem:[%s4586_s1 + $0xf0] sm:$0xf0]  ;;  %v3635_v52 = vld [vmem:[%s4586_s1 + $0xb8] sm:$0xf] }
 0x53b   : > { %v3632_v58 = vor.u32 %v4199_v51, %v3629_v53  ;;  %v4271_v51 = vld [vmem:[%s4598_s27 + $0x1f0] sm:$0xff]  ;;  %v4246_v53 = vld [vmem:[%s4598_s27 + $0x128] sm:$0xff] }
 0x53c   : > { %v1421_v3 = vmul.f32 %v4820_v2, %v4820_v2  ;;  %1802 = vmatpush.bf16.msrb.mxu3 %v3608_v56  ;;  %v3637_v56 = vld [vmem:[%s4586_s1 + $0xf8] sm:$0xf0] }
 0x53d   : > { %v3640_v60 = vor.u32 %v4200_v55, %v3637_v56  ;;  %v4253_v55 = vld [vmem:[%s4598_s27 + $0x160] sm:$0xff]  ;;  %v4262_v56 = vld [vmem:[%s4598_s27 + $0x1a8] sm:$0xff] }
 0x53e   : > { %v1425_v4 = vsel %vm671_vm1, %v1421_v3, 0.0 }
 0x53f   : > { %1426 = vadd.xlane.f32.xlu1 %v1425_v4 }
 0x540   : > { %1803 = vmatpush.bf16.msrb.mxu3 %v3544_v1  ;;  %v3573_v1 = vld [vmem:[%s4586_s1 + $0x78] sm:$0xf0] }
 0x59e   : > { %v1424_v5 = vpop.xlane.xlu2 %1423 }
 0x59f   : > { %v1428_v8 = vmul.f32 %v1424_v5, %v4811_v63 }
 0x5a1   : > { %v4826_v9 = vadd.f32 1e-05, %v1428_v8 }
 0x5a3   : > { %4426 = vrsqrt.f32 %v4826_v9  ;;  %vm1438_vm10 = vweird.f32 %v4826_v9 }
 0x5a9   : > { %v4832_v15 = vpop.eup %4426 }
 0x5aa   : > { %v1433_v21 = vmul.f32 %v4832_v15, %v4826_v9  ;;  %vm1439_vm9 = vweird.f32 %v4832_v15 }
 0x5ab   : > { %vm1440_vm11 = vmor %vm1438_vm10, %vm1439_vm9 }
 0x5ac   : > { %v1434_v31 = vmul.f32 %v4832_v15, %v1433_v21 }
 0x5ae   : > { %v1435_v41 = vmul.f32 0.5, %v1434_v31 }
 0x5b0   : > { %v1436_v23 = vsub.f32 1.5, %v1435_v41  ;;  %v3555_v41 = vld [vmem:[%s4586_s1 + $0x28] sm:$0xf] }
 0x5b2   : > { %v1427_v42 = vpop.xlane.xlu1 %1426  ;;  %v1437_v4 = vmul.f32 %v4832_v15, %v1436_v23  ;;  %v3564_v23 = vor.u32 %v4191_v29, %v3563_v59  ;;  %v4252_v59 = vld [vmem:[%s4598_s27 + $0x158] sm:$0xff]  ;;  %v4261_v29 = vld [vmem:[%s4598_s27 + $0x1a0] sm:$0xff] }
 0x5b3   : > { %v1429_v45 = vmul.f32 %v1427_v42, %v4811_v63  ;;  %v4190_v42 = vld [vmem:[%s4586_s1 + $0x64] sm:$0xf0] }
 0x5b4   : > { %v1441_v11 = vsel %vm1440_vm11, %v4832_v15, %v1437_v4  ;;  %v3556_v47 = vor.u32 %v4190_v42, %v3555_v41  ;;  %v3572_v4 = vor.u32 %v4192_v7, %v3571_v12  ;;  %v4217_v41 = vld [vmem:[%s4598_s27 + $0x40] sm:$0xff]  ;;  %v4248_v42 = vld [vmem:[%s4598_s27 + $0x138] sm:$0xff]  ;;  %v4242_v7 = vld [vmem:[%s4598_s27 + $0x108] sm:$0xff] }
 0x5b5   : > { %v1431_v54 = vadd.f32 1e-05, %v1429_v45  ;;  %v1452_v16 = vmul.f32 %v1441_v11, %v4814_v14  ;;  %v4205_v14 = vld [vmem:[%s4586_s1 + $0xdc] sm:$0xf0]  ;;  %v3548_v45 = vor.u32 %v4189_v37, %v3547_v36  ;;  %v4224_v11 = vld [vmem:[%s4598_s27 + $0x78] sm:$0xff]  ;;  %v4227_v36 = vld [vmem:[%s4598_s27 + $0x90] sm:$0xff] }
 0x5b6   : > { %v3612_v34 = vor.u32 %v4205_v14, %v3611_v24  ;;  %v4213_v24 = vld [vmem:[%s4598_s27 + $0x20] sm:$0xff]  ;;  %v4235_v37 = vld [vmem:[%s4598_s27 + $0xd0] sm:$0xff]  ;;  %v4268_v12 = vld [vmem:[%s4598_s27 + $0x1d8] sm:$0xff] }
 0x5b7   : > { %4428 = vrsqrt.f32 %v1431_v54  ;;  %vm1448_vm13 = vweird.f32 %v1431_v54  ;;  %v1458_v20 = vmul.f32 %v4387_v25, %v1452_v16  ;;  %v4223_v16 = vld [vmem:[%s4598_s27 + $0x70] sm:$0xff]  ;;  %v4221_v14 = vld [vmem:[%s4598_s27 + $0x60] sm:$0xff] }
 0x5b9   : > { %v4888_v31 = vadd.f32 %v4388_v19, %v1458_v20  ;;  %v4222_v20 = vld [vmem:[%s4598_s27 + $0x68] sm:$0xff] }
 0x5bd   : > { %v4429_v3 = vpop.eup %4428 }
 0x5be   : > { %v1443_v5 = vmul.f32 %v4429_v3, %v1431_v54  ;;  %vm1449_vm12 = vweird.f32 %v4429_v3  ;;  %v4208_v54 = vld [vmem:[%s4586_s1 + $0xf4] sm:$0xf0] }
 0x5bf   : > { %vm1450_vm14 = vmor %vm1448_vm13, %vm1449_vm12  ;;  %v3636_v18 = vor.u32 %v4208_v54, %v3635_v52  ;;  %v4254_v52 = vld [vmem:[%s4598_s27 + $0x168] sm:$0xff]  ;;  %v4245_v54 = vld [vmem:[%s4598_s27 + $0x120] sm:$0xff] }
 0x5c0   : > { %v1444_v8 = vmul.f32 %v4429_v3, %v1443_v5  ;;  %v3576_v5 = vor.u32 %v4184_v0, %v3573_v1  ;;  %v4250_v0 = vld [vmem:[%s4598_s27 + $0x148] sm:$0xff]  ;;  %v4259_v1 = vld [vmem:[%s4598_s27 + $0x190] sm:$0xff] }
 0x5c2   : > { %v1445_v13 = vmul.f32 0.5, %v1444_v8  ;;  %v4216_v8 = vld [vmem:[%s4598_s27 + $0x38] sm:$0xff] }
 0x5c4   : > { %v1446_v61 = vsub.f32 1.5, %v1445_v13  ;;  %v4232_v13 = vld [vmem:[%s4598_s27 + $0xb8] sm:$0xff] }
 0x5c6   : > { %v1447_v9 = vmul.f32 %v4429_v3, %v1446_v61  ;;  %v4240_v61 = vld [vmem:[%s4598_s27 + $0xf8] sm:$0xff] }
 0x5c8   : > { %v1451_v15 = vsel %vm1450_vm14, %v4429_v3, %v1447_v9  ;;  %v3568_v3 = vor.u32 %v4183_v62, %v3565_v6  ;;  %v4231_v9 = vld [vmem:[%s4598_s27 + $0xb0] sm:$0xff]  ;;  %v4260_v6 = vld [vmem:[%s4598_s27 + $0x198] sm:$0xff] }
 0x5c9   : > { %v1453_v21 = vmul.f32 %v1451_v15, %v4820_v2  ;;  %v3621_v2 = vld [vmem:[%s4586_s1 + $0xe8] sm:$0xf0]  ;;  %v4239_v15 = vld [vmem:[%s4598_s27 + $0xf0] sm:$0xff] }
 0x5ca   : > { %v3624_v10 = vor.u32 %v4198_v48, %v3621_v2  ;;  %v4228_v48 = vld [vmem:[%s4598_s27 + $0x98] sm:$0xff]  ;;  %v4251_v62 = vld [vmem:[%s4598_s27 + $0x150] sm:$0xff] }
 0x5cb   : > { %v1459_v22 = vmul.f32 %v4387_v25, %v1453_v21  ;;  %v4215_v25 = vld [vmem:[%s4598_s27 + $0x30] sm:$0xff]  ;;  %v4230_v21 = vld [vmem:[%s4598_s27 + $0xa8] sm:$0xff]  ;;  %v4236_v2 = vld [vmem:[%s4598_s27 + $0xd8] sm:$0xff] }
 0x5cd   : > { %v4890_v30 = vadd.f32 %v4388_v19, %v1459_v22  ;;  %v4214_v19 = vld [vmem:[%s4598_s27 + $0x28] sm:$0xff] }
 0x5ce   : > { %v4238_v22 = vld [vmem:[%s4598_s27 + $0xe8] sm:$0xff] }
 0x5cf   : > { %v4897_v33 = vpack.c.bf16 %v4890_v30, %v4888_v31 }
 0x5d1   : > { %3641 = vmatmul.msk.bf16.vlgmr.msra.gmra.mxu0 %vm671_vm1, %v4897_v33  ;;  %3642 = vmatmul.msk.bf16.vlgmr.msrb.gmra.mxu1 %vm671_vm1, %v4897_v33 }
 0x5d2   : > { %3643 = vmatmul.msk.bf16.vlgmr.msrb.gmra.mxu2 %vm671_vm1, %v4897_v33  ;;  %3644 = vmatmul.msk.bf16.vlgmr.msra.gmra.mxu3 %vm671_vm1, %v4897_v33 }
 0x5d3   : > { %1816 = vmatpush.bf16.msra.mxu0 %v3612_v34  ;;  %1830 = vmatpush.bf16.msrb.mxu1 %v3616_v35  ;;  %v4211_v34 = vld [vmem:[%s4598_s27 + $0x10] sm:$0xff] }
 0x5d4   : > { %1844 = vmatpush.bf16.msrb.mxu2 %v3620_v38  ;;  %1858 = vmatpush.bf16.msra.mxu3 %v3624_v10  ;;  %v4219_v35 = vld [vmem:[%s4598_s27 + $0x50] sm:$0xff]  ;;  %v4210_v38 = vld [vmem:[%s4598_s27 + $0x8] sm:$0xff] }
 0x5d5   : > { %v4226_v10 = vld [vmem:[%s4598_s27 + $0x88] sm:$0xff] }
 0x5d7   : > { %1817 = vmatpush.bf16.msra.mxu0 %v3548_v45  ;;  %1831 = vmatpush.bf16.msrb.mxu1 %v3552_v46  ;;  %v4233_v45 = vld [vmem:[%s4598_s27 + $0xc0] sm:$0xff]  ;;  %v4264_v46 = vld [vmem:[%s4598_s27 + $0x1b8] sm:$0xff] }
 0x5d8   : > { %1845 = vmatpush.bf16.msrb.mxu2 %v3556_v47  ;;  %1859 = vmatpush.bf16.msra.mxu3 %v3560_v49  ;;  %v4272_v47 = vld [vmem:[%s4598_s27 + $0x1f8] sm:$0xff]  ;;  %v4247_v49 = vld [vmem:[%s4598_s27 + $0x130] sm:$0xff] }
 0x5e1   : > { %3645 = vmatmul.msk.bf16.vlgmr.msrb.gmra.mxu0 %vm671_vm1, %v4897_v33  ;;  %3646 = vmatmul.msk.bf16.vlgmr.msra.gmra.mxu1 %vm671_vm1, %v4897_v33 }
 0x5e2   : > { %3647 = vmatmul.msk.bf16.vlgmr.msra.gmra.mxu2 %vm671_vm1, %v4897_v33  ;;  %3648 = vmatmul.msk.bf16.vlgmr.msrb.gmra.mxu3 %vm671_vm1, %v4897_v33 }
 0x5e3   : > { %1872 = vmatpush.bf16.msrb.mxu0 %v3628_v57  ;;  %1886 = vmatpush.bf16.msra.mxu1 %v3632_v58  ;;  %v4270_v57 = vld [vmem:[%s4598_s27 + $0x1e8] sm:$0xff]  ;;  %v4244_v58 = vld [vmem:[%s4598_s27 + $0x118] sm:$0xff] }
 0x5e4   : > { %1900 = vmatpush.bf16.msra.mxu2 %v3636_v18  ;;  %1914 = vmatpush.bf16.msrb.mxu3 %v3640_v60  ;;  %v4269_v18 = vld [vmem:[%s4598_s27 + $0x1e0] sm:$0xff]  ;;  %v4243_v60 = vld [vmem:[%s4598_s27 + $0x110] sm:$0xff] }
 0x5e7   : > { %1873 = vmatpush.bf16.msrb.mxu0 %v3564_v23  ;;  %1887 = vmatpush.bf16.msra.mxu1 %v3568_v3  ;;  %v4267_v23 = vld [vmem:[%s4598_s27 + $0x1d0] sm:$0xff]  ;;  %v4241_v3 = vld [vmem:[%s4598_s27 + $0x100] sm:$0xff] }
 0x5e8   : > { %1901 = vmatpush.bf16.msra.mxu2 %v3572_v4  ;;  %1915 = vmatpush.bf16.msrb.mxu3 %v3576_v5  ;;  %v4249_v4 = vld [vmem:[%s4598_s27 + $0x140] sm:$0xff]  ;;  %v4258_v5 = vld [vmem:[%s4598_s27 + $0x188] sm:$0xff] }
 0x5f1   : > { %3649 = vmatmul.msk.bf16.vlgmr.msra.gmra.mxu0 %vm671_vm1, %v4897_v33  ;;  %3650 = vmatmul.msk.bf16.vlgmr.msrb.gmra.mxu1 %vm671_vm1, %v4897_v33 }
 0x5f2   : > { %3651 = vmatmul.msk.bf16.vlgmr.msrb.gmra.mxu2 %vm671_vm1, %v4897_v33  ;;  %3652 = vmatmul.msk.bf16.vlgmr.msra.gmra.mxu3 %vm671_vm1, %v4897_v33 }
 0x5f3   : > { %2998 = vmatpush.bf16.msra.mxu0 %v4216_v8  ;;  %3012 = vmatpush.bf16.msrb.mxu1 %v4224_v11  ;;  %v4266_v8 = vld [vmem:[%s4598_s27 + $0x1c8] sm:$0xff]  ;;  %v4257_v11 = vld [vmem:[%s4598_s27 + $0x180] sm:$0xff] }
 0x5f4   : > { %3026 = vmatpush.bf16.msrb.mxu2 %v4232_v13  ;;  %3040 = vmatpush.bf16.msra.mxu3 %v4240_v61  ;;  %v4265_v13 = vld [vmem:[%s4598_s27 + $0x1c0] sm:$0xff] }
 0x5f5   : > { %v5020_v61 = vld [vmem:[%s4592_s23] sm:$0xff] }
 0x5f7   : > { %2999 = vmatpush.bf16.msra.mxu0 %v4215_v25  ;;  %3013 = vmatpush.bf16.msrb.mxu1 %v4223_v16 }
 0x5f8   : > { %3027 = vmatpush.bf16.msrb.mxu2 %v4231_v9  ;;  %3041 = vmatpush.bf16.msra.mxu3 %v4239_v15  ;;  %v1503_v9 = vperm.slane %v5020_v61, 0  ;;  %v1504_v15 = vperm.slane %v5020_v61, 1 }
 0x5fb   : > { %3000 = vmatpush.bf16.msra.mxu0 %v4214_v19  ;;  %3014 = vmatpush.bf16.msrb.mxu1 %v4222_v20 }
 0x5fc   : > { %3028 = vmatpush.bf16.msrb.mxu2 %v4230_v21  ;;  %3042 = vmatpush.bf16.msra.mxu3 %v4238_v22 }
 0x5ff   : > { %3001 = vmatpush.bf16.msra.mxu0 %v4213_v24  ;;  %3015 = vmatpush.bf16.msrb.mxu1 %v4221_v14 }
 0x600   : > { %3029 = vmatpush.bf16.msrb.mxu2 %v4229_v26  ;;  %3043 = vmatpush.bf16.msra.mxu3 %v4237_v27 }
 0x601   : > { %3653 = vmatmul.msk.bf16.vlgmr.msrb.gmra.mxu0 %vm671_vm1, %v4897_v33  ;;  %3654 = vmatmul.msk.bf16.vlgmr.msra.gmra.mxu1 %vm671_vm1, %v4897_v33 }
 0x602   : > { %3655 = vmatmul.msk.bf16.vlgmr.msra.gmra.mxu2 %vm671_vm1, %v4897_v33  ;;  %3656 = vmatmul.msk.bf16.vlgmr.msrb.gmra.mxu3 %vm671_vm1, %v4897_v33  ;;  %v4218_v33 = vld [vmem:[%s4598_s27 + $0x48] sm:$0xff] }
 0x603   : > { %3002 = vmatpush.bf16.msra.mxu0 %v4212_v28  ;;  %3016 = vmatpush.bf16.msrb.mxu1 %v4220_v32  ;;  %v1505_v28 = vperm.slane %v5020_v61, 2  ;;  %v1506_v32 = vperm.slane %v5020_v61, 3 }
 0x604   : > { %3030 = vmatpush.bf16.msrb.mxu2 %v4228_v48  ;;  %3044 = vmatpush.bf16.msra.mxu3 %v4236_v2 }
 0x607   : > { %3003 = vmatpush.bf16.msra.mxu0 %v4211_v34  ;;  %3017 = vmatpush.bf16.msrb.mxu1 %v4219_v35 }
 0x608   : > { %3031 = vmatpush.bf16.msrb.mxu2 %v4227_v36  ;;  %3045 = vmatpush.bf16.msra.mxu3 %v4235_v37  ;;  %v4280_v36 = vld [vmem:[%s4598_s27 + $0x238] sm:$0xff] }
 0x609   : > { %v4288_v37 = vld [vmem:[%s4598_s27 + $0x278] sm:$0xff] }
 0x60b   : > { %3004 = vmatpush.bf16.msra.mxu0 %v4210_v38  ;;  %3018 = vmatpush.bf16.msrb.mxu1 %v4218_v33 }
 0x60c   : > { %3032 = vmatpush.bf16.msrb.mxu2 %v4226_v10  ;;  %3046 = vmatpush.bf16.msra.mxu3 %v4234_v39 }
 0x60f   : > { %3005 = vmatpush.bf16.msra.mxu0 %v4209_v40  ;;  %3019 = vmatpush.bf16.msrb.mxu1 %v4217_v41 }
 0x610   : > { %3033 = vmatpush.bf16.msrb.mxu2 %v4225_v44  ;;  %3047 = vmatpush.bf16.msra.mxu3 %v4233_v45 }
 0x613   : > { %3054 = vmatpush.bf16.msrb.mxu0 %v4248_v42  ;;  %3068 = vmatpush.bf16.msra.mxu1 %v4256_v43 }
 0x614   : > { %3082 = vmatpush.bf16.msra.mxu2 %v4264_v46  ;;  %3096 = vmatpush.bf16.msrb.mxu3 %v4272_v47  ;;  %v4279_v46 = vld [vmem:[%s4598_s27 + $0x230] sm:$0xff] }
 0x615   : > { %v4287_v47 = vld [vmem:[%s4598_s27 + $0x270] sm:$0xff] }
 0x617   : > { %3055 = vmatpush.bf16.msrb.mxu0 %v4247_v49  ;;  %3069 = vmatpush.bf16.msra.mxu1 %v4255_v17 }
 0x618   : > { %3083 = vmatpush.bf16.msra.mxu2 %v4263_v50  ;;  %3097 = vmatpush.bf16.msrb.mxu3 %v4271_v51 }
 0x61b   : > { %3056 = vmatpush.bf16.msrb.mxu0 %v4246_v53  ;;  %3070 = vmatpush.bf16.msra.mxu1 %v4254_v52  ;;  %v1507_v53 = vperm.slane %v5020_v61, 4  ;;  %v1508_v52 = vperm.slane %v5020_v61, 5 }
 0x61c   : > { %3084 = vmatpush.bf16.msra.mxu2 %v4262_v56  ;;  %3098 = vmatpush.bf16.msrb.mxu3 %v4270_v57 }
 0x61f   : > { %3057 = vmatpush.bf16.msrb.mxu0 %v4245_v54  ;;  %3071 = vmatpush.bf16.msra.mxu1 %v4253_v55  ;;  %v4296_v54 = vld [vmem:[%s4598_s27 + $0x2b8] sm:$0xff] }
 0x620   : > { %3085 = vmatpush.bf16.msra.mxu2 %v4261_v29  ;;  %3099 = vmatpush.bf16.msrb.mxu3 %v4269_v18  ;;  %v4304_v55 = vld [vmem:[%s4598_s27 + $0x2f8] sm:$0xff] }
 0x623   : > { %3058 = vmatpush.bf16.msrb.mxu0 %v4244_v58  ;;  %3072 = vmatpush.bf16.msra.mxu1 %v4252_v59  ;;  %v4278_v58 = vld [vmem:[%s4598_s27 + $0x228] sm:$0xff] }
 0x624   : > { %3086 = vmatpush.bf16.msra.mxu2 %v4260_v6  ;;  %3100 = vmatpush.bf16.msrb.mxu3 %v4268_v12  ;;  %v4286_v59 = vld [vmem:[%s4598_s27 + $0x268] sm:$0xff]  ;;  %v4295_v6 = vld [vmem:[%s4598_s27 + $0x2b0] sm:$0xff] }
 0x625   : > { %v4303_v12 = vld [vmem:[%s4598_s27 + $0x2f0] sm:$0xff] }
 0x627   : > { %3059 = vmatpush.bf16.msrb.mxu0 %v4243_v60  ;;  %3073 = vmatpush.bf16.msra.mxu1 %v4251_v62 }
 0x628   : > { %3087 = vmatpush.bf16.msra.mxu2 %v4259_v1  ;;  %3101 = vmatpush.bf16.msrb.mxu3 %v4267_v23  ;;  %v4277_v1 = vld [vmem:[%s4598_s27 + $0x220] sm:$0xff] }
 0x629   : > { %v4285_v23 = vld [vmem:[%s4598_s27 + $0x260] sm:$0xff] }
 0x62b   : > { %3060 = vmatpush.bf16.msrb.mxu0 %v4242_v7  ;;  %3074 = vmatpush.bf16.msra.mxu1 %v4250_v0 }
 0x62c   : > { %3088 = vmatpush.bf16.msra.mxu2 %v4258_v5  ;;  %3102 = vmatpush.bf16.msrb.mxu3 %v4266_v8  ;;  %v1509_v5 = vperm.slane %v5020_v61, 6  ;;  %v1510_v8 = vperm.slane %v5020_v61, 7 }
 0x62f   : > { %3061 = vmatpush.bf16.msrb.mxu0 %v4241_v3  ;;  %3075 = vmatpush.bf16.msra.mxu1 %v4249_v4 }
 0x630   : > { %3089 = vmatpush.bf16.msra.mxu2 %v4257_v11  ;;  %3103 = vmatpush.bf16.msrb.mxu3 %v4265_v13 }
 0x64e   : > { %v1707_v25 = vpop.f32.mrf.mxu0  ;;  %v1721_v16 = vpop.f32.mrf.mxu1 }
 0x64f   : > { %v1708_v19 = vadd.f32 %v1707_v25, %v1503_v9  ;;  %v1722_v20 = vadd.f32 %v1721_v16, %v1504_v15 }
 0x651   : > { %v1922_v48 = vmax.f32 %v1708_v19, 0.0  ;;  %v1923_v2 = vmax.f32 %v1722_v20, 0.0 }
 0x655   : > { %v1735_v21 = vpop.f32.mrf.mxu2  ;;  %v1749_v22 = vpop.f32.mrf.mxu3 }
 0x656   : > { %v1709_v24 = vpop.f32.mrf.mxu0  ;;  %v1723_v14 = vpop.f32.mrf.mxu1  ;;  %v1736_v10 = vadd.f32 %v1735_v21, %v1505_v28  ;;  %v1750_v39 = vadd.f32 %v1749_v22, %v1506_v32  ;;  %v4276_v21 = vld [vmem:[%s4598_s27 + $0x218] sm:$0xff] }
 0x657   : > { %v1710_v26 = vadd.f32 %v1709_v24, %v1503_v9  ;;  %v1724_v27 = vadd.f32 %v1723_v14, %v1504_v15  ;;  %v4294_v9 = vld [vmem:[%s4598_s27 + $0x2a8] sm:$0xff]  ;;  %v4284_v22 = vld [vmem:[%s4598_s27 + $0x258] sm:$0xff] }
 0x658   : > { %v1924_v49 = vmax.f32 %v1736_v10, 0.0  ;;  %v1925_v17 = vmax.f32 %v1750_v39, 0.0  ;;  %v4302_v15 = vld [vmem:[%s4598_s27 + $0x2e8] sm:$0xff] }
 0x659   : > { %v1938_v34 = vmax.f32 %v1710_v26, 0.0  ;;  %v1939_v35 = vmax.f32 %v1724_v27, 0.0  ;;  %v4293_v27 = vld [vmem:[%s4598_s27 + $0x2a0] sm:$0xff] }
 0x65b   : > { %v1954_v38 = vpack.c.bf16 %v1938_v34, %v1922_v48  ;;  %v1955_v33 = vpack.c.bf16 %v1939_v35, %v1923_v2  ;;  %v5049_v2 = vld [vmem:[%s4592_s23 + $0x8] sm:$0xff] }
 0x65d   : > { %v1737_v40 = vpop.f32.mrf.mxu2  ;;  %v1751_v41 = vpop.f32.mrf.mxu3  ;;  %3006 = vmatmul.bf16.vlgmr.msra.gmra.mxu0 %v1954_v38  ;;  %3020 = vmatmul.bf16.vlgmr.msrb.gmra.mxu1 %v1955_v33 }
 0x65e   : > { %v1738_v42 = vadd.f32 %v1737_v40, %v1505_v28  ;;  %v1752_v43 = vadd.f32 %v1751_v41, %v1506_v32  ;;  %3110 = vmatpush.bf16.msra.mxu0 %v4280_v36  ;;  %3124 = vmatpush.bf16.msrb.mxu1 %v4288_v37  ;;  %v1763_v44 = vpop.f32.mrf.mxu0  ;;  %v1777_v45 = vpop.f32.mrf.mxu1  ;;  %v4301_v28 = vld [vmem:[%s4598_s27 + $0x2e0] sm:$0xff]  ;;  %v4275_v36 = vld [vmem:[%s4598_s27 + $0x210] sm:$0xff]  ;;  %v1511_v40 = vperm.slane %v5049_v2, 0  ;;  %v1512_v41 = vperm.slane %v5049_v2, 1 }
 0x65f   : > { %v1764_v29 = vadd.f32 %v1763_v44, %v1507_v53  ;;  %v1778_v18 = vadd.f32 %v1777_v45, %v1508_v52  ;;  %v4283_v37 = vld [vmem:[%s4598_s27 + $0x250] sm:$0xff] }
 0x660   : > { %v1940_v50 = vmax.f32 %v1738_v42, 0.0  ;;  %v1941_v51 = vmax.f32 %v1752_v43, 0.0  ;;  %v4292_v42 = vld [vmem:[%s4598_s27 + $0x298] sm:$0xff] }
 0x661   : > { %v1926_v11 = vmax.f32 %v1764_v29, 0.0  ;;  %v1927_v13 = vmax.f32 %v1778_v18, 0.0  ;;  %v4300_v43 = vld [vmem:[%s4598_s27 + $0x2d8] sm:$0xff]  ;;  %v1513_v29 = vperm.slane %v5049_v2, 2  ;;  %v1514_v18 = vperm.slane %v5049_v2, 3 }
 0x662   : > { %v1956_v56 = vpack.c.bf16 %v1940_v50, %v1924_v49  ;;  %v1957_v57 = vpack.c.bf16 %v1941_v51, %v1925_v17  ;;  %3111 = vmatpush.bf16.msra.mxu0 %v4279_v46  ;;  %3125 = vmatpush.bf16.msrb.mxu1 %v4287_v47  ;;  %v4274_v46 = vld [vmem:[%s4598_s27 + $0x208] sm:$0xff] }
 0x663   : > { %v4282_v47 = vld [vmem:[%s4598_s27 + $0x248] sm:$0xff] }
 0x664   : > { %3034 = vmatmul.bf16.vlgmr.msrb.gmra.mxu2 %v1956_v56  ;;  %3048 = vmatmul.bf16.vlgmr.msra.gmra.mxu3 %v1957_v57 }
 0x665   : > { %3138 = vmatpush.bf16.msrb.mxu2 %v4296_v54  ;;  %3152 = vmatpush.bf16.msra.mxu3 %v4304_v55  ;;  %v1791_v60 = vpop.f32.mrf.mxu2  ;;  %v1805_v62 = vpop.f32.mrf.mxu3 }
 0x666   : > { %3112 = vmatpush.bf16.msra.mxu0 %v4278_v58  ;;  %3126 = vmatpush.bf16.msrb.mxu1 %v4286_v59  ;;  %v1765_v7 = vpop.f32.mrf.mxu0  ;;  %v1779_v0 = vpop.f32.mrf.mxu1  ;;  %v1792_v24 = vadd.f32 %v1791_v60, %v1509_v5  ;;  %v1806_v14 = vadd.f32 %v1805_v62, %v1510_v8  ;;  %v4273_v58 = vld [vmem:[%s4598_s27 + $0x200] sm:$0xff]  ;;  %v4312_v60 = vld [vmem:[%s4598_s27 + $0x338] sm:$0xff] }
 0x667   : > { %v1766_v3 = vadd.f32 %v1765_v7, %v1507_v53  ;;  %v1780_v4 = vadd.f32 %v1779_v0, %v1508_v52  ;;  %v4291_v53 = vld [vmem:[%s4598_s27 + $0x290] sm:$0xff]  ;;  %v4281_v59 = vld [vmem:[%s4598_s27 + $0x240] sm:$0xff]  ;;  %v4320_v62 = vld [vmem:[%s4598_s27 + $0x378] sm:$0xff] }
 0x668   : > { %v1928_v38 = vmax.f32 %v1792_v24, 0.0  ;;  %v1929_v33 = vmax.f32 %v1806_v14, 0.0  ;;  %v4299_v52 = vld [vmem:[%s4598_s27 + $0x2d0] sm:$0xff] }
 0x669   : > { %v1942_v25 = vmax.f32 %v1766_v3, 0.0  ;;  %v1943_v16 = vmax.f32 %v1780_v4, 0.0  ;;  %3139 = vmatpush.bf16.msrb.mxu2 %v4295_v6  ;;  %3153 = vmatpush.bf16.msra.mxu3 %v4303_v12 }
 0x66a   : > { %3113 = vmatpush.bf16.msra.mxu0 %v4277_v1  ;;  %3127 = vmatpush.bf16.msrb.mxu1 %v4285_v23  ;;  %v4290_v1 = vld [vmem:[%s4598_s27 + $0x288] sm:$0xff] }
 0x66b   : > { %v1958_v19 = vpack.c.bf16 %v1942_v25, %v1926_v11  ;;  %v1959_v20 = vpack.c.bf16 %v1943_v16, %v1927_v13  ;;  %v4298_v23 = vld [vmem:[%s4598_s27 + $0x2c8] sm:$0xff]  ;;  %v4311_v11 = vld [vmem:[%s4598_s27 + $0x330] sm:$0xff] }
 0x66c   : > { %v4319_v13 = vld [vmem:[%s4598_s27 + $0x370] sm:$0xff] }
 0x66d   : > { %3140 = vmatpush.bf16.msrb.mxu2 %v4294_v9  ;;  %3154 = vmatpush.bf16.msra.mxu3 %v4302_v15  ;;  %v1793_v61 = vpop.f32.mrf.mxu2  ;;  %v1807_v26 = vpop.f32.mrf.mxu3  ;;  %v4289_v9 = vld [vmem:[%s4598_s27 + $0x280] sm:$0xff] }
 0x66e   : > { %v1794_v32 = vadd.f32 %v1793_v61, %v1509_v5  ;;  %v1808_v48 = vadd.f32 %v1807_v26, %v1510_v8  ;;  %3062 = vmatmul.bf16.vlgmr.msrb.gmra.mxu0 %v1958_v19  ;;  %3076 = vmatmul.bf16.vlgmr.msra.gmra.mxu1 %v1959_v20  ;;  %v1819_v34 = vpop.f32.mrf.mxu0  ;;  %v1833_v35 = vpop.f32.mrf.mxu1  ;;  %v4297_v15 = vld [vmem:[%s4598_s27 + $0x2c0] sm:$0xff] }
 0x66f   : > { %3114 = vmatpush.bf16.msra.mxu0 %v4276_v21  ;;  %3128 = vmatpush.bf16.msrb.mxu1 %v4284_v22  ;;  %v1820_v49 = vadd.f32 %v1819_v34, %v1511_v40  ;;  %v1834_v17 = vadd.f32 %v1833_v35, %v1512_v41  ;;  %v4328_v21 = vld [vmem:[%s4598_s27 + $0x3b8] sm:$0xff]  ;;  %v4327_v34 = vld [vmem:[%s4598_s27 + $0x3b0] sm:$0xff] }
 0x670   : > { %v1944_v10 = vmax.f32 %v1794_v32, 0.0  ;;  %v1945_v39 = vmax.f32 %v1808_v48, 0.0  ;;  %v4336_v22 = vld [vmem:[%s4598_s27 + $0x3f8] sm:$0xff]  ;;  %v4335_v35 = vld [vmem:[%s4598_s27 + $0x3f0] sm:$0xff] }
 0x671   : > { %3141 = vmatpush.bf16.msrb.mxu2 %v4293_v27  ;;  %3155 = vmatpush.bf16.msra.mxu3 %v4301_v28  ;;  %v1930_v6 = vmax.f32 %v1820_v49, 0.0  ;;  %v1931_v12 = vmax.f32 %v1834_v17, 0.0  ;;  %v4310_v27 = vld [vmem:[%s4598_s27 + $0x328] sm:$0xff] }
 0x672   : > { %v1960_v44 = vpack.c.bf16 %v1944_v10, %v1928_v38  ;;  %v1961_v45 = vpack.c.bf16 %v1945_v39, %v1929_v33  ;;  %v4318_v28 = vld [vmem:[%s4598_s27 + $0x368] sm:$0xff]  ;;  %v4309_v38 = vld [vmem:[%s4598_s27 + $0x320] sm:$0xff] }
 0x673   : > { %3115 = vmatpush.bf16.msra.mxu0 %v4275_v36  ;;  %3129 = vmatpush.bf16.msrb.mxu1 %v4283_v37  ;;  %v4317_v33 = vld [vmem:[%s4598_s27 + $0x360] sm:$0xff]  ;;  %v4326_v10 = vld [vmem:[%s4598_s27 + $0x3a8] sm:$0xff] }
 0x674   : > { %3090 = vmatmul.bf16.vlgmr.msra.gmra.mxu2 %v1960_v44  ;;  %3104 = vmatmul.bf16.vlgmr.msrb.gmra.mxu3 %v1961_v45  ;;  %v4334_v39 = vld [vmem:[%s4598_s27 + $0x3e8] sm:$0xff]  ;;  %v4325_v44 = vld [vmem:[%s4598_s27 + $0x3a0] sm:$0xff] }
 0x675   : > { %3142 = vmatpush.bf16.msrb.mxu2 %v4292_v42  ;;  %3156 = vmatpush.bf16.msra.mxu3 %v4300_v43  ;;  %v1847_v50 = vpop.f32.mrf.mxu2  ;;  %v1861_v51 = vpop.f32.mrf.mxu3  ;;  %v4333_v45 = vld [vmem:[%s4598_s27 + $0x3e0] sm:$0xff] }
 0x676   : > { %v1821_v54 = vpop.f32.mrf.mxu0  ;;  %v1835_v55 = vpop.f32.mrf.mxu1  ;;  %v1848_v5 = vadd.f32 %v1847_v50, %v1513_v29  ;;  %v1862_v8 = vadd.f32 %v1861_v51, %v1514_v18  ;;  %v4324_v50 = vld [vmem:[%s4598_s27 + $0x398] sm:$0xff] }
 0x677   : > { %3116 = vmatpush.bf16.msra.mxu0 %v4274_v46  ;;  %3130 = vmatpush.bf16.msrb.mxu1 %v4282_v47  ;;  %v1822_v56 = vadd.f32 %v1821_v54, %v1511_v40  ;;  %v1836_v57 = vadd.f32 %v1835_v55, %v1512_v41  ;;  %v4308_v40 = vld [vmem:[%s4598_s27 + $0x318] sm:$0xff]  ;;  %v4307_v46 = vld [vmem:[%s4598_s27 + $0x310] sm:$0xff]  ;;  %v4306_v54 = vld [vmem:[%s4598_s27 + $0x308] sm:$0xff] }
 0x678   : > { %v1932_v24 = vmax.f32 %v1848_v5, 0.0  ;;  %v1933_v14 = vmax.f32 %v1862_v8, 0.0  ;;  %v4316_v41 = vld [vmem:[%s4598_s27 + $0x358] sm:$0xff]  ;;  %v4315_v47 = vld [vmem:[%s4598_s27 + $0x350] sm:$0xff]  ;;  %v4314_v55 = vld [vmem:[%s4598_s27 + $0x348] sm:$0xff] }
 0x679   : > { %v1946_v7 = vmax.f32 %v1822_v56, 0.0  ;;  %v1947_v0 = vmax.f32 %v1836_v57, 0.0  ;;  %3143 = vmatpush.bf16.msrb.mxu2 %v4291_v53  ;;  %3157 = vmatpush.bf16.msra.mxu3 %v4299_v52  ;;  %v4332_v51 = vld [vmem:[%s4598_s27 + $0x3d8] sm:$0xff]  ;;  %v1515_v53 = vperm.slane %v5049_v2, 4  ;;  %v1516_v52 = vperm.slane %v5049_v2, 5 }
 0x67b   : > { %v1962_v3 = vpack.c.bf16 %v1946_v7, %v1930_v6  ;;  %v1963_v4 = vpack.c.bf16 %v1947_v0, %v1931_v12  ;;  %3117 = vmatpush.bf16.msra.mxu0 %v4273_v58  ;;  %3131 = vmatpush.bf16.msrb.mxu1 %v4281_v59  ;;  %v4323_v58 = vld [vmem:[%s4598_s27 + $0x390] sm:$0xff]  ;;  %v4305_v6 = vld [vmem:[%s4598_s27 + $0x300] sm:$0xff]  ;;  %v1517_v7 = vperm.slane %v5049_v2, 6  ;;  %v1518_v0 = vperm.slane %v5049_v2, 7 }
 0x67c   : > { %v4331_v59 = vld [vmem:[%s4598_s27 + $0x3d0] sm:$0xff]  ;;  %v4313_v12 = vld [vmem:[%s4598_s27 + $0x340] sm:$0xff] }
 0x67d   : > { %3144 = vmatpush.bf16.msrb.mxu2 %v4290_v1  ;;  %3158 = vmatpush.bf16.msra.mxu3 %v4298_v23  ;;  %v1849_v25 = vpop.f32.mrf.mxu2  ;;  %v1863_v16 = vpop.f32.mrf.mxu3  ;;  %v4321_v2 = vld [vmem:[%s4598_s27 + $0x380] sm:$0xff] }
 0x67e   : > { %v1850_v19 = vadd.f32 %v1849_v25, %v1513_v29  ;;  %v1864_v20 = vadd.f32 %v1863_v16, %v1514_v18  ;;  %3118 = vmatmul.bf16.vlgmr.msra.gmra.mxu0 %v1962_v3  ;;  %3132 = vmatmul.bf16.vlgmr.msrb.gmra.mxu1 %v1963_v4  ;;  %v1875_v36 = vpop.f32.mrf.mxu0  ;;  %v1889_v37 = vpop.f32.mrf.mxu1  ;;  %v4322_v3 = vld [vmem:[%s4598_s27 + $0x388] sm:$0xff] }
 0x67f   : > { %3166 = vmatpush.bf16.msrb.mxu0 %v4312_v60  ;;  %3180 = vmatpush.bf16.msra.mxu1 %v4320_v62  ;;  %v1876_v29 = vadd.f32 %v1875_v36, %v1515_v53  ;;  %v1890_v18 = vadd.f32 %v1889_v37, %v1516_v52  ;;  %v4330_v4 = vld [vmem:[%s4598_s27 + $0x3c8] sm:$0xff] }
 0x680   : > { %v1948_v61 = vmax.f32 %v1850_v19, 0.0  ;;  %v1949_v26 = vmax.f32 %v1864_v20, 0.0  ;;  %v4329_v19 = vld [vmem:[%s4598_s27 + $0x3c0] sm:$0xff] }
 0x681   : > { %3145 = vmatpush.bf16.msrb.mxu2 %v4289_v9  ;;  %3159 = vmatpush.bf16.msra.mxu3 %v4297_v15  ;;  %v1934_v5 = vmax.f32 %v1876_v29, 0.0  ;;  %v1935_v8 = vmax.f32 %v1890_v18, 0.0 }
 0x682   : > { %v1964_v32 = vpack.c.bf16 %v1948_v61, %v1932_v24  ;;  %v1965_v48 = vpack.c.bf16 %v1949_v26, %v1933_v14 }
 0x683   : > { %3167 = vmatpush.bf16.msrb.mxu0 %v4311_v11  ;;  %3181 = vmatpush.bf16.msra.mxu1 %v4319_v13 }
 0x684   : > { %3146 = vmatmul.bf16.vlgmr.msrb.gmra.mxu2 %v1964_v32  ;;  %3160 = vmatmul.bf16.vlgmr.msra.gmra.mxu3 %v1965_v48 }
 0x685   : > { %3194 = vmatpush.bf16.msra.mxu2 %v4328_v21  ;;  %3208 = vmatpush.bf16.msrb.mxu3 %v4336_v22  ;;  %v1903_v42 = vpop.f32.mrf.mxu2  ;;  %v1917_v43 = vpop.f32.mrf.mxu3 }
 0x686   : > { %v1877_v49 = vpop.f32.mrf.mxu0  ;;  %v1891_v17 = vpop.f32.mrf.mxu1  ;;  %v1904_v25 = vadd.f32 %v1903_v42, %v1517_v7  ;;  %v1918_v16 = vadd.f32 %v1917_v43, %v1518_v0 }
 0x687   : > { %3168 = vmatpush.bf16.msrb.mxu0 %v4310_v27  ;;  %3182 = vmatpush.bf16.msra.mxu1 %v4318_v28  ;;  %v1878_v56 = vadd.f32 %v1877_v49, %v1515_v53  ;;  %v1892_v57 = vadd.f32 %v1891_v17, %v1516_v52 }
 0x688   : > { %v1936_v22 = vmax.f32 %v1904_v25, 0.0  ;;  %v1937_v24 = vmax.f32 %v1918_v16, 0.0 }
 0x689   : > { %3195 = vmatpush.bf16.msra.mxu2 %v4327_v34  ;;  %3209 = vmatpush.bf16.msrb.mxu3 %v4335_v35  ;;  %v1950_v1 = vmax.f32 %v1878_v56, 0.0  ;;  %v1951_v23 = vmax.f32 %v1892_v57, 0.0  ;;  %v4389_v35 = vld [vmem:[%s638_s15] ss:$0 sm:$0xff] }
 0x68b   : > { %3169 = vmatpush.bf16.msrb.mxu0 %v4309_v38  ;;  %3183 = vmatpush.bf16.msra.mxu1 %v4317_v33  ;;  %v1966_v9 = vpack.c.bf16 %v1950_v1, %v1934_v5  ;;  %v1967_v15 = vpack.c.bf16 %v1951_v23, %v1935_v8 }
 0x68d   : > { %3196 = vmatpush.bf16.msra.mxu2 %v4326_v10  ;;  %3210 = vmatpush.bf16.msrb.mxu3 %v4334_v39  ;;  %v1905_v60 = vpop.f32.mrf.mxu2  ;;  %v1919_v62 = vpop.f32.mrf.mxu3 }
 0x68e   : > { %v1906_v11 = vadd.f32 %v1905_v60, %v1517_v7  ;;  %v1920_v13 = vadd.f32 %v1919_v62, %v1518_v0 }
 0x68f   : > { %3170 = vmatpush.bf16.msrb.mxu0 %v4308_v40  ;;  %3184 = vmatpush.bf16.msra.mxu1 %v4316_v41 }
 0x690   : > { %v1952_v20 = vmax.f32 %v1906_v11, 0.0  ;;  %v1953_v21 = vmax.f32 %v1920_v13, 0.0 }
 0x691   : > { %3197 = vmatpush.bf16.msra.mxu2 %v4325_v44  ;;  %3211 = vmatpush.bf16.msrb.mxu3 %v4333_v45 }
 0x692   : > { %v1968_v14 = vpack.c.bf16 %v1952_v20, %v1936_v22  ;;  %v1969_v61 = vpack.c.bf16 %v1953_v21, %v1937_v24 }
 0x693   : > { %3171 = vmatpush.bf16.msrb.mxu0 %v4307_v46  ;;  %3185 = vmatpush.bf16.msra.mxu1 %v4315_v47 }
 0x695   : > { %3198 = vmatpush.bf16.msra.mxu2 %v4324_v50  ;;  %3212 = vmatpush.bf16.msrb.mxu3 %v4332_v51 }
 0x697   : > { %3172 = vmatpush.bf16.msrb.mxu0 %v4306_v54  ;;  %3186 = vmatpush.bf16.msra.mxu1 %v4314_v55 }
 0x699   : > { %3199 = vmatpush.bf16.msra.mxu2 %v4323_v58  ;;  %3213 = vmatpush.bf16.msrb.mxu3 %v4331_v59 }
 0x69b   : > { %3173 = vmatpush.bf16.msrb.mxu0 %v4305_v6  ;;  %3187 = vmatpush.bf16.msra.mxu1 %v4313_v12 }
 0x69d   : > { %3200 = vmatpush.bf16.msra.mxu2 %v4322_v3  ;;  %3214 = vmatpush.bf16.msrb.mxu3 %v4330_v4 }
 0x69e   : > { %3174 = vmatmul.bf16.vlgmr.msrb.gmra.mxu0 %v1966_v9  ;;  %3188 = vmatmul.bf16.vlgmr.msra.gmra.mxu1 %v1967_v15 }
 0x6a1   : > { %3201 = vmatpush.bf16.msra.mxu2 %v4321_v2  ;;  %3215 = vmatpush.bf16.msrb.mxu3 %v4329_v19 }
 0x6a4   : > { %3202 = vmatmul.bf16.vlgmr.msra.gmra.mxu2 %v1968_v14  ;;  %3216 = vmatmul.bf16.vlgmr.msrb.gmra.mxu3 %v1969_v61 }
 0x6da   : > { %v3007_v26 = vpop.f32.mrf.mxu0  ;;  %v3021_v27 = vpop.f32.mrf.mxu1 }
 0x6db   : > { %v3008_v33 = vadd.f32 %v4389_v35, %v3007_v26 }
 0x6dd   : > { %v3022_v39 = vadd.f32 %v3021_v27, %v3008_v33 }
 0x6e2   : > { %v3009_v28 = vpop.f32.mrf.mxu0  ;;  %v3023_v34 = vpop.f32.mrf.mxu1 }
 0x6e3   : > { %v3010_v44 = vadd.f32 %v4389_v35, %v3009_v28 }
 0x6e5   : > { %v3024_v46 = vadd.f32 %v3023_v34, %v3010_v44 }
 0x6e7   : > { %v3035_v32 = vpop.f32.mrf.mxu2  ;;  %v3049_v48 = vpop.f32.mrf.mxu3 }
 0x6e8   : > { %v3036_v40 = vadd.f32 %v3035_v32, %v3022_v39 }
 0x6ea   : > { %v3050_v45 = vadd.f32 %v3049_v48, %v3036_v40 }
 0x6eb   : > { %v3063_v36 = vpop.f32.mrf.mxu0  ;;  %v3077_v10 = vpop.f32.mrf.mxu1 }
 0x6ec   : > { %v3064_v49 = vadd.f32 %v3063_v36, %v3050_v45 }
 0x6ee   : > { %v3078_v52 = vadd.f32 %v3077_v10, %v3064_v49 }
 0x6ef   : > { %v3037_v37 = vpop.f32.mrf.mxu2  ;;  %v3051_v38 = vpop.f32.mrf.mxu3 }
 0x6f0   : > { %v3038_v17 = vadd.f32 %v3037_v37, %v3024_v46 }
 0x6f2   : > { %v3052_v54 = vadd.f32 %v3051_v38, %v3038_v17 }
 0x6f3   : > { %v3065_v41 = vpop.f32.mrf.mxu0  ;;  %v3079_v47 = vpop.f32.mrf.mxu1 }
 0x6f4   : > { %v3066_v56 = vadd.f32 %v3065_v41, %v3052_v54 }
 0x6f6   : > { %v3080_v59 = vadd.f32 %v3079_v47, %v3066_v56 }
 0x6f7   : > { %v3091_v42 = vpop.f32.mrf.mxu2  ;;  %v3105_v43 = vpop.f32.mrf.mxu3 }
 0x6f8   : > { %v3092_v55 = vadd.f32 %v3091_v42, %v3078_v52 }
 0x6fa   : > { %v3106_v58 = vadd.f32 %v3105_v43, %v3092_v55 }
 0x6fb   : > { %v3119_v50 = vpop.f32.mrf.mxu0  ;;  %v3133_v57 = vpop.f32.mrf.mxu1 }
 0x6fc   : > { %v3120_v62 = vadd.f32 %v3119_v50, %v3106_v58 }
 0x6fe   : > { %v3134_v12 = vadd.f32 %v3133_v57, %v3120_v62  ;;  %v4390_v57 = vld [vmem:[%s641_s16] ss:$0 sm:$0xff] }
 0x6ff   : > { %v3093_v51 = vpop.f32.mrf.mxu2  ;;  %v3107_v53 = vpop.f32.mrf.mxu3 }
 0x700   : > { %v3094_v6 = vadd.f32 %v3093_v51, %v3080_v59  ;;  %v4391_v59 = vld [vmem:[%s644_s20] ss:$0 sm:$0xff] }
 0x702   : > { %v3108_v7 = vadd.f32 %v3107_v53, %v3094_v6 }
 0x703   : > { %v3121_v29 = vpop.f32.mrf.mxu0  ;;  %v3135_v0 = vpop.f32.mrf.mxu1 }
 0x704   : > { %v3122_v3 = vadd.f32 %v3121_v29, %v3108_v7 }
 0x706   : > { %v3136_v11 = vadd.f32 %v3135_v0, %v3122_v3 }
 0x707   : > { %v3147_v18 = vpop.f32.mrf.mxu2  ;;  %v3161_v60 = vpop.f32.mrf.mxu3 }
 0x708   : > { %v3148_v1 = vadd.f32 %v3147_v18, %v3134_v12 }
 0x70a   : > { %v3162_v8 = vadd.f32 %v3161_v60, %v3148_v1 }
 0x70f   : > { %v3149_v4 = vpop.f32.mrf.mxu2  ;;  %v3163_v5 = vpop.f32.mrf.mxu3 }
 0x710   : > { %v3150_v16 = vadd.f32 %v3149_v4, %v3136_v11 }
 0x712   : > { %v3164_v20 = vadd.f32 %v3163_v5, %v3150_v16 }
 0x71b   : > { %v3175_v23 = vpop.f32.mrf.mxu0  ;;  %v3189_v25 = vpop.f32.mrf.mxu1 }
 0x71c   : > { %v3176_v13 = vadd.f32 %v3175_v23, %v3162_v8 }
 0x71e   : > { %v3190_v9 = vadd.f32 %v3189_v25, %v3176_v13 }
 0x723   : > { %v3177_v15 = vpop.f32.mrf.mxu0  ;;  %v3191_v61 = vpop.f32.mrf.mxu1 }
 0x724   : > { %v3178_v22 = vadd.f32 %v3177_v15, %v3164_v20 }
 0x726   : > { %v3192_v26 = vadd.f32 %v3191_v61, %v3178_v22 }
 0x727   : > { %v3203_v2 = vpop.f32.mrf.mxu2  ;;  %v3217_v19 = vpop.f32.mrf.mxu3 }
 0x728   : > { %v3204_v21 = vadd.f32 %v3203_v2, %v3190_v9 }
 0x72a   : > { %v3218_v24 = vadd.f32 %v3217_v19, %v3204_v21 }
 0x72c   : > { %v3222_v14 = vadd.f32 %v3218_v24, %v4888_v31 }
 0x72e   : > { %v3224_v27 = vsel %vm671_vm1, %v3222_v14, 0.0 }
 0x72f   : > { %v3205_v28 = vpop.f32.mrf.mxu2  ;;  %3225 = vadd.xlane.f32.xlu0 %v3224_v27  ;;  %v3219_v48 = vpop.f32.mrf.mxu3 }
 0x730   : > { %v3206_v32 = vadd.f32 %v3205_v28, %v3192_v26 }
 0x732   : > { %v3220_v34 = vadd.f32 %v3219_v48, %v3206_v32 }
 0x734   : > { %v3223_v35 = vadd.f32 %v3220_v34, %v4890_v30 }
 0x736   : > { %v3227_v36 = vsel %vm671_vm1, %v3223_v35, 0.0 }
 0x737   : > { %3228 = vadd.xlane.f32.xlu2 %v3227_v36 }
 0x7a2   : > { %v3226_v37 = vpop.xlane.xlu0 %3225 }
 0x7a3   : > { %v3230_v38 = vmul.f32 %v3226_v37, %v4811_v63 }
 0x7a5   : > { %v3232_v33 = vsub.f32 %v3222_v14, %v3230_v38 }
 0x7a7   : > { %v3234_v10 = vmul.f32 %v3232_v33, %v3232_v33 }
 0x7a9   : > { %v3236_v31 = vsel %vm671_vm1, %v3234_v10, 0.0 }
 0x7aa   : > { %v3229_v39 = vpop.xlane.xlu2 %3228  ;;  %3237 = vadd.xlane.f32.xlu1 %v3236_v31 }
 0x7ab   : > { %v3231_v40 = vmul.f32 %v3229_v39, %v4811_v63 }
 0x7ad   : > { %v3233_v41 = vsub.f32 %v3223_v35, %v3231_v40 }
 0x7af   : > { %v3235_v42 = vmul.f32 %v3233_v41, %v3233_v41 }
 0x7b1   : > { %v3239_v43 = vsel %vm671_vm1, %v3235_v42, 0.0 }
 0x7b2   : > { %3240 = vadd.xlane.f32.xlu0 %v3239_v43 }
 0x81d   : > { %v3238_v30 = vpop.xlane.xlu1 %3237 }
 0x81e   : > { %v3242_v44 = vmul.f32 %v3238_v30, %v4811_v63 }
 0x820   : > { %v3244_v45 = vadd.f32 1e-05, %v3242_v44 }
 0x822   : > { %4430 = vrsqrt.f32 %v3244_v45  ;;  %vm3252_vm0 = vweird.f32 %v3244_v45 }
 0x825   : > { %v3241_v46 = vpop.xlane.xlu0 %3240 }
 0x826   : > { %v3243_v47 = vmul.f32 %v3241_v46, %v4811_v63 }
 0x828   : > { %v4431_v49 = vpop.eup %4430  ;;  %v3245_v17 = vadd.f32 1e-05, %v3243_v47 }
 0x829   : > { %v3247_v50 = vmul.f32 %v4431_v49, %v3244_v45  ;;  %vm3253_vm15 = vweird.f32 %v4431_v49 }
 0x82a   : > { %4432 = vrsqrt.f32 %v3245_v17  ;;  %vm3254_vm3 = vmor %vm3252_vm0, %vm3253_vm15  ;;  %vm3262_vm5 = vweird.f32 %v3245_v17 }
 0x82b   : > { %v3248_v51 = vmul.f32 %v4431_v49, %v3247_v50 }
 0x82d   : > { %v3249_v53 = vmul.f32 0.5, %v3248_v51 }
 0x82f   : > { %v3250_v52 = vsub.f32 1.5, %v3249_v53 }
 0x830   : > { %v4433_v54 = vpop.eup %4432 }
 0x831   : > { %v3251_v55 = vmul.f32 %v4431_v49, %v3250_v52  ;;  %v3257_v56 = vmul.f32 %v4433_v54, %v3245_v17  ;;  %vm3263_vm4 = vweird.f32 %v4433_v54 }
 0x832   : > { %vm3264_vm6 = vmor %vm3262_vm5, %vm3263_vm4 }
 0x833   : > { %v3255_v63 = vsel %vm3254_vm3, %v4431_v49, %v3251_v55  ;;  %v3258_v58 = vmul.f32 %v4433_v54, %v3257_v56 }
 0x834   : > { %v3266_v29 = vmul.f32 %v3255_v63, %v3232_v33 }
 0x835   : > { %v3259_v18 = vmul.f32 0.5, %v3258_v58 }
 0x836   : > { %v3272_v60 = vmul.f32 %v4390_v57, %v3266_v29 }
 0x837   : > { %v3260_v62 = vsub.f32 1.5, %v3259_v18 }
 0x838   : > { %v3278_v6 = vadd.f32 %v4391_v59, %v3272_v60 }
 0x839   : > { %v3261_v12 = vmul.f32 %v4433_v54, %v3260_v62 }
 0x83a   : > { %3280 = vst.msk [vmem:[%s5179_s18] sm:$0xff] %vm671_vm1, %v3278_v6 }
 0x83b   : > { %v3265_v7 = vsel %vm3264_vm6, %v4433_v54, %v3261_v12 }
 0x83c   : > { %v3267_v0 = vmul.f32 %v3265_v7, %v3233_v41 }
 0x83e   : > { %v3273_v1 = vmul.f32 %v4390_v57, %v3267_v0 }
 0x840   : > { %v3279_v23 = vadd.f32 %v4391_v59, %v3273_v1 }
 0x842   : > { %3281 = vst.msk [vmem:[%s5179_s18 + $0x8] sm:$0xff] %vm671_vm1, %v3279_v23 }
 0x843 PF: > { %s5188_s20 = sld [smem:[#allocation3_spill]] }
 0x844   : > { %s5189_s25 = sld [smem:[#allocation2_spill]] }
 0x845   : > { %s5190_s26 = sld [smem:[#allocation4_spill]] }
 0x849   : > { %s23_s27 = sadd.s32 1, %s5188_s20  }
 0x84a   : > { %p20_p6 = scmp.ge.s32.totalorder %s23_s27, 4  }
 0x84c   :  { %22 = sbr.rel (!%p20_p6) target bundleno = 6 (0x6), region = 142 }

</bundles_post_ra>
